<compile_context>
chip_gen: v7x
topology: tpu7x:2x2x1
jax: 0.10.0
libtpu: 0.0.40
codegen_flags: <defaults>
</compile_context>

<pallas_src>
import functools

import jax
import jax.numpy as jnp
from jax.experimental import pallas as pl
from jax.experimental.pallas import tpu as pltpu

_BN_EPS = 1e-5
_LANE = 128


def _round_up(x, m):
    return (x + m - 1) // m * m


# Derive the VMEM budget from the actual chip instead of hard-coding 32 MiB.
def _query_vmem_limit():
    try:
        info = pltpu.get_tpu_info()
        cap = getattr(info, "vmem_capacity_bytes", None)
        if cap:
            return int(min(int(cap) * 3 // 4, 128 * 1024 * 1024))
    except Exception:
        pass
    return None


_VMEM_LIMIT = _query_vmem_limit()


def _compiler_params():
    kw = dict(dimension_semantics=("parallel",))
    if _VMEM_LIMIT is not None:
        kw["vmem_limit_bytes"] = _VMEM_LIMIT
    return pltpu.CompilerParams(**kw)


# --------------------------------------------------------------------------
# Fused BasicBlock kernel factory
# --------------------------------------------------------------------------
def _make_basic_block_kernel(Ho, Wo, Cinp, Cp, strided, projection):
    """conv1(3x3,s)+BN1+ReLU -> conv2(3x3,1)+BN2 -> (+shortcut) -> ReLU."""
    M = Ho * Wo

    def kernel(*refs):
        if projection:
            (x_ref, w1_ref, s1_ref, b1_ref, w2_ref, s2_ref, b2_ref,
             wsc_ref, ssc_ref, bsc_ref, o_ref, hid_ref) = refs
        else:
            (x_ref, w1_ref, s1_ref, b1_ref, w2_ref, s2_ref, b2_ref,
             o_ref, hid_ref) = refs

        # ---------------- conv1 (3x3, stride s) + BN1 + ReLU -------------
        if strided:
            # Pre-gathered bf16 taps (Ho, Wo, 9*Cinp): one K=9*Cinp matmul
            # fills the 256-wide MXU and leaves no partial-add chain.
            acc1 = jnp.dot(x_ref[...].reshape(M, 9 * Cinp), w1_ref[...],
                           preferred_element_type=jnp.float32)
        else:
            # bf16 padded image (H+2, W+2, Cinp): group the 3 dx taps of a
            # row into one K=3*Cinp matmul -> 3 MXU pushes + 2 adds per conv.
            acc1 = None
            for dy in range(3):
                lhs = jnp.concatenate(
                    [x_ref[dy:dy + Ho, dx:dx + Wo, :] for dx in range(3)],
                    axis=-1).reshape(M, 3 * Cinp)
                part = jnp.dot(lhs, w1_ref[dy],
                               preferred_element_type=jnp.float32)
                acc1 = part if acc1 is None else acc1 + part
        h = jnp.maximum(acc1 * s1_ref[...] + b1_ref[...], 0.0)

        # ------------- stash conv1 output in VMEM scratch (pad = 1) -------
        # Zero only the 1-wide border; the interior store overwrites the rest.
        zrow = jnp.zeros((1, Wo + 2, Cp), jnp.float32)
        zcol = jnp.zeros((Ho, 1, Cp), jnp.float32)
        hid_ref[0:1, :, :] = zrow
        hid_ref[Ho + 1:Ho + 2, :, :] = zrow
        hid_ref[1:Ho + 1, 0:1, :] = zcol
        hid_ref[1:Ho + 1, Wo + 1:Wo + 2, :] = zcol
        hid_ref[1:Ho + 1, 1:Wo + 1, :] = h.reshape(Ho, Wo, Cp)

        # ---------------- conv2 (3x3, stride 1) + BN2 ---------------------
        acc2 = None
        for dy in range(3):
            lhs = jnp.concatenate(
                [hid_ref[dy:dy + Ho, dx:dx + Wo, :] for dx in range(3)],
                axis=-1).astype(jnp.bfloat16).reshape(M, 3 * Cp)
            part = jnp.dot(lhs, w2_ref[dy], preferred_element_type=jnp.float32)
            acc2 = part if acc2 is None else acc2 + part
        out = acc2 * s2_ref[...] + b2_ref[...]

        # ---------------- shortcut + residual add + ReLU ------------------
        if projection:
            if strided:
                # Centre tap (dy=1, dx=1) == the 1x1 stride-s conv patches;
                # a lane-aligned channel slice of the gathered input.
                sc_lhs = x_ref[:, :, 4 * Cinp:5 * Cinp].reshape(M, Cinp)
            else:
                sc_lhs = x_ref[1:Ho + 1, 1:Wo + 1, :].reshape(M, Cinp)
            sc = jnp.dot(sc_lhs, wsc_ref[...],
                         preferred_element_type=jnp.float32)
            sc = sc * ssc_ref[...] + bsc_ref[...]
        else:
            # Identity shortcut: upcast so the residual add stays in f32.
            sc = x_ref[1:Ho + 1, 1:Wo + 1, :].astype(jnp.float32).reshape(M, Cp)

        o_ref[...] = jnp.maximum(out + sc, 0.0).reshape(
            Ho, Wo, Cp).astype(o_ref.dtype)

    return kernel


# --------------------------------------------------------------------------
# BasicBlock forward (Pallas path)
# --------------------------------------------------------------------------
@functools.partial(jax.jit, static_argnums=(2,))
def basic_block_forward(x_nchw, p, stride):
    x = jnp.transpose(x_nchw, (0, 2, 3, 1)).astype(jnp.float32)   # NHWC
    N, H, W, Cin = x.shape
    planes = p["w1"].shape[0]
    projection = (stride != 1) or (Cin != planes)
    strided = stride != 1

    Ho = (H + 2 - 3) // stride + 1
    Wo = (W + 2 - 3) // stride + 1
    Cinp = _round_up(Cin, _LANE)       # lane-dense channel padding
    Cp = _round_up(planes, _LANE)

    # One padded bf16 copy of the input (spatial pad=1, channel pad to 128).
    xp = jnp.pad(x.astype(jnp.bfloat16),
                 ((0, 0), (1, 1), (1, 1), (0, Cinp - Cin)))

    if strided:
        # Pre-gather the 9 strided tap windows in bf16, channel-major, so
        # conv1 becomes a single K=9*Cinp matmul per image.
        taps = jnp.stack(
            [xp[:, dy:dy + (Ho - 1) * stride + 1:stride,
                   dx:dx + (Wo - 1) * stride + 1:stride, :]
             for dy in range(3) for dx in range(3)],
            axis=3)                                    # (N, Ho, Wo, 9, Cinp)
        x_in = taps.reshape(N, Ho, Wo, 9 * Cinp)
        x_spec = pl.BlockSpec((None, Ho, Wo, 9 * Cinp),
                              lambda n: (n, 0, 0, 0))
    else:
        # Stride-1: the bf16 padded image goes straight to the kernel.
        x_in = xp                                      # (N, H+2, W+2, Cinp)
        x_spec = pl.BlockSpec((None, H + 2, W + 2, Cinp),
                              lambda n: (n, 0, 0, 0))

    # Weights: (Cout, Cin, kh, kw) -> (kh*kw, Cin_p, Cout_p), bf16.
    def conv_w(w, ci_p, co_p):
        co, ci, kh, kw = w.shape
        wm = jnp.transpose(w, (2, 3, 1, 0)).reshape(kh * kw, ci, co)
        wm = jnp.pad(wm, ((0, 0), (0, ci_p - ci), (0, co_p - co)))
        return wm.astype(jnp.bfloat16)

    # BN (inference) folded into per-channel scale/shift, padded to Cp.
    def bn_fold(g, b, m, v):
        inv = g / jnp.sqrt(v + _BN_EPS)
        scale = jnp.pad(inv, (0, Cp - inv.shape[0])).reshape(1, Cp)
        shift = jnp.pad(b - m * inv, (0, Cp - b.shape[0])).reshape(1, Cp)
        return scale.astype(jnp.float32), shift.astype(jnp.float32)

    w1 = conv_w(p["w1"], Cinp, Cp)                     # (9, Cinp, Cp)
    if strided:
        w1 = w1.reshape(9 * Cinp, Cp)                  # row index = t*Cinp + c
        w1_spec = pl.BlockSpec((9 * Cinp, Cp), lambda n: (0, 0))
    else:
        w1 = w1.reshape(3, 3 * Cinp, Cp)               # grouped by dy
        w1_spec = pl.BlockSpec((3, 3 * Cinp, Cp), lambda n: (0, 0, 0))
    w2 = conv_w(p["w2"], Cp, Cp).reshape(3, 3 * Cp, Cp)
    s1, b1 = bn_fold(p["g1"], p["b1"], p["m1"], p["v1"])
    s2, b2 = bn_fold(p["g2"], p["b2"], p["m2"], p["v2"])

    vec_spec = pl.BlockSpec((1, Cp), lambda n: (0, 0))
    args = [x_in, w1, s1, b1, w2, s2, b2]
    in_specs = [x_spec,
                w1_spec,
                vec_spec, vec_spec,
                pl.BlockSpec((3, 3 * Cp, Cp), lambda n: (0, 0, 0)),
                vec_spec, vec_spec]
    if projection:
        wsc = conv_w(p["wsc"], Cinp, Cp)[0]            # (Cinp, Cp)
        ssc, bsc = bn_fold(p["gsc"], p["bsc"], p["msc"], p["vsc"])
        args += [wsc, ssc, bsc]
        in_specs += [pl.BlockSpec((Cinp, Cp), lambda n: (0, 0)),
                     vec_spec, vec_spec]

    kernel = _make_basic_block_kernel(Ho, Wo, Cinp, Cp, strided, projection)

    out = pl.pallas_call(
        kernel,
        out_shape=jax.ShapeDtypeStruct((N, Ho, Wo, Cp), jnp.float32),
        grid=(N,),
        in_specs=in_specs,
        out_specs=pl.BlockSpec((None, Ho, Wo, Cp), lambda n: (n, 0, 0, 0)),
        scratch_shapes=[pltpu.VMEM((Ho + 2, Wo + 2, Cp), jnp.float32)],
        compiler_params=_compiler_params(),
    )(*args)

    out = out[..., :planes]                            # drop lane padding
    return jnp.transpose(out, (0, 3, 1, 2))            # back to NCHW


# --------------------------------------------------------------------------
# Pure-JAX reference (for correctness check)
# --------------------------------------------------------------------------
def _ref_forward(x, p, stride):
    def conv(x, w, s, pad):
        return jax.lax.conv_general_dilated(
            x, w, (s, s), ((pad, pad), (pad, pad)),
            dimension_numbers=("NCHW", "OIHW", "NCHW"))

    def bn(x, g, b, m, v, eps=_BN_EPS):
        inv = g / jnp.sqrt(v + eps)
        return x * inv[None, :, None, None] + (b - m * inv)[None, :, None, None]

    out = jax.nn.relu(bn(conv(x, p["w1"], stride, 1),
                         p["g1"], p["b1"], p["m1"], p["v1"]))
    out = bn(conv(out, p["w2"], 1, 1), p["g2"], p["b2"], p["m2"], p["v2"])
    if stride != 1 or x.shape[1] != p["w1"].shape[0]:
        sc = bn(conv(x, p["wsc"], stride, 0),
                p["gsc"], p["bsc"], p["msc"], p["vsc"])
    else:
        sc = x
    return jax.nn.relu(out + sc)


# --------------------------------------------------------------------------
# Deterministic parameter construction + demo
# --------------------------------------------------------------------------
def make_params(key, in_planes, planes, stride):
    ks = jax.random.split(key, 16)
    u = lambda k, shape, lo, hi: jax.random.uniform(
        k, shape, jnp.float32, lo, hi)
    p = {
        "w1": 0.1 * jax.random.normal(ks[0], (planes, in_planes, 3, 3), jnp.float32),
        "g1": u(ks[1], (planes,), 0.8, 1.2),
        "b1": u(ks[2], (planes,), -0.1, 0.1),
        "m1": u(ks[3], (planes,), -0.1, 0.1),
        "v1": u(ks[4], (planes,), 0.5, 1.5),
        "w2": 0.1 * jax.random.normal(ks[5], (planes, planes, 3, 3), jnp.float32),
        "g2": u(ks[6], (planes,), 0.8, 1.2),
        "b2": u(ks[7], (planes,), -0.1, 0.1),
        "m2": u(ks[8], (planes,), -0.1, 0.1),
        "v2": u(ks[9], (planes,), 0.5, 1.5),
    }
    if stride != 1 or in_planes != planes:
        p.update({
            "wsc": 0.1 * jax.random.normal(ks[10], (planes, in_planes, 1, 1), jnp.float32),
            "gsc": u(ks[11], (planes,), 0.8, 1.2),
            "bsc": u(ks[12], (planes,), -0.1, 0.1),
            "msc": u(ks[13], (planes,), -0.1, 0.1),
            "vsc": u(ks[14], (planes,), 0.5, 1.5),
        })
    return p


def _check(out, ref, rel_tol=3e-2):
    assert out.shape == ref.shape, (out.shape, ref.shape)
    err = float(jnp.max(jnp.abs(out - ref)))
    scale = max(1.0, float(jnp.max(jnp.abs(ref))))
    assert err < rel_tol * scale, (err, scale)


if __name__ == "__main__":
    key = jax.random.PRNGKey(0)
    k1, k2, k3, k4 = jax.random.split(key, 4)

    # Case 1: downsampling block (stride 2, projection shortcut).
    N, in_planes, planes, H, W, stride = 2, 4, 8, 16, 16, 2
    x = jax.random.normal(k1, (N, in_planes, H, W), jnp.float32)   # NCHW
    params = make_params(k2, in_planes, planes, stride)
    out = jax.block_until_ready(basic_block_forward(x, params, stride))
    ref = jax.block_until_ready(_ref_forward(x, params, stride))
    _check(out, ref)

    # Case 2: identity block (stride 1, in_planes == planes).
    x2 = jax.random.normal(k3, (2, 8, 16, 16), jnp.float32)
    params2 = make_params(k4, 8, 8, 1)
    out2 = jax.block_until_ready(basic_block_forward(x2, params2, 1))
    ref2 = jax.block_until_ready(_ref_forward(x2, params2, 1))
    _check(out2, ref2)

    print("KERNEL_OK")
</pallas_src>

<mosaic_0001>
module attributes {stable_mosaic.version = 11 : i64} {
  func.func @kernel(%arg0: i32, %arg1: memref<1x8x8x1152xbf16, #tpu.memory_space<vmem>>, %arg2: memref<1152x128xbf16, #tpu.memory_space<vmem>>, %arg3: memref<1x128xf32, #tpu.memory_space<vmem>>, %arg4: memref<1x128xf32, #tpu.memory_space<vmem>>, %arg5: memref<3x384x128xbf16, #tpu.memory_space<vmem>>, %arg6: memref<1x128xf32, #tpu.memory_space<vmem>>, %arg7: memref<1x128xf32, #tpu.memory_space<vmem>>, %arg8: memref<128x128xbf16, #tpu.memory_space<vmem>>, %arg9: memref<1x128xf32, #tpu.memory_space<vmem>>, %arg10: memref<1x128xf32, #tpu.memory_space<vmem>>, %arg11: memref<1x8x8x128xf32, #tpu.memory_space<vmem>>, %arg12: memref<10x10x128xf32, #tpu.memory_space<vmem>>) attributes {dimension_semantics = [#tpu.dimension_semantics<parallel>], iteration_bounds = array<i64: 2>, scalar_prefetch = 0 : i64, scratch_operands = 1 : i64, tpu.core_type = #tpu.core_type<tc>, window_params = [{transform_indices = @transform_0, window_bounds = array<i64: 1, 8, 8, 1152>}, {pipeline_mode = #tpu.pipeline_mode<synchronous>, transform_indices = @transform_1, window_bounds = array<i64: 1152, 128>}, {pipeline_mode = #tpu.pipeline_mode<synchronous>, transform_indices = @transform_2, window_bounds = array<i64: 1, 128>}, {pipeline_mode = #tpu.pipeline_mode<synchronous>, transform_indices = @transform_3, window_bounds = array<i64: 1, 128>}, {pipeline_mode = #tpu.pipeline_mode<synchronous>, transform_indices = @transform_4, window_bounds = array<i64: 3, 384, 128>}, {pipeline_mode = #tpu.pipeline_mode<synchronous>, transform_indices = @transform_5, window_bounds = array<i64: 1, 128>}, {pipeline_mode = #tpu.pipeline_mode<synchronous>, transform_indices = @transform_6, window_bounds = array<i64: 1, 128>}, {pipeline_mode = #tpu.pipeline_mode<synchronous>, transform_indices = @transform_7, window_bounds = array<i64: 128, 128>}, {pipeline_mode = #tpu.pipeline_mode<synchronous>, transform_indices = @transform_8, window_bounds = array<i64: 1, 128>}, {pipeline_mode = #tpu.pipeline_mode<synchronous>, transform_indices = @transform_9, window_bounds = array<i64: 1, 128>}, {transform_indices = @transform_10, window_bounds = array<i64: 1, 8, 8, 128>}]} {
    %c0 = arith.constant 0 : index
    %c0_0 = arith.constant 0 : index
    %c0_1 = arith.constant 0 : index
    %c0_2 = arith.constant 0 : index
    %0 = vector.load %arg1[%c0, %c0_0, %c0_1, %c0_2] : memref<1x8x8x1152xbf16, #tpu.memory_space<vmem>>, vector<1x8x8x1152xbf16>
    %1 = vector.shape_cast %0 : vector<1x8x8x1152xbf16> to vector<8x8x1152xbf16>
    %2 = vector.shape_cast %1 : vector<8x8x1152xbf16> to vector<64x1152xbf16>
    %c0_3 = arith.constant 0 : index
    %c0_4 = arith.constant 0 : index
    %3 = vector.load %arg2[%c0_3, %c0_4] : memref<1152x128xbf16, #tpu.memory_space<vmem>>, vector<1152x128xbf16>
    %cst = arith.constant dense<0.000000e+00> : vector<64x128xf32>
    %4 = tpu.matmul %2, %3, %cst {dimension_numbers = #tpu.dot_dimension_numbers<[1], [0], [0], [1], [0, 0, 1, 1], [], []>} : vector<64x1152xbf16>, vector<1152x128xbf16>, vector<64x128xf32> -> vector<64x128xf32>
    %c0_5 = arith.constant 0 : index
    %c0_6 = arith.constant 0 : index
    %5 = vector.load %arg3[%c0_5, %c0_6] : memref<1x128xf32, #tpu.memory_space<vmem>>, vector<1x128xf32>
    %6 = vector.broadcast %5 : vector<1x128xf32> to vector<64x128xf32>
    %7 = arith.mulf %4, %6 : vector<64x128xf32>
    %c0_7 = arith.constant 0 : index
    %c0_8 = arith.constant 0 : index
    %8 = vector.load %arg4[%c0_7, %c0_8] : memref<1x128xf32, #tpu.memory_space<vmem>>, vector<1x128xf32>
    %9 = vector.broadcast %8 : vector<1x128xf32> to vector<64x128xf32>
    %10 = arith.addf %7, %9 : vector<64x128xf32>
    %cst_9 = arith.constant 0.000000e+00 : f32
    %11 = vector.broadcast %cst_9 : f32 to vector<64x128xf32>
    %12 = arith.maximumf %10, %11 : vector<64x128xf32>
    %cst_10 = arith.constant 0.000000e+00 : f32
    %13 = vector.broadcast %cst_10 : f32 to vector<1x10x128xf32>
    %cst_11 = arith.constant 0.000000e+00 : f32
    %14 = vector.broadcast %cst_11 : f32 to vector<8x1x128xf32>
    %c0_12 = arith.constant 0 : index
    %c0_13 = arith.constant 0 : index
    %c0_14 = arith.constant 0 : index
    %15 = vector.load %arg12[%c0_12, %c0_13, %c0_14] : memref<10x10x128xf32, #tpu.memory_space<vmem>>, vector<1x10x128xf32>
    tpu.vector_store %arg12[%c0_12, %c0_13, %c0_14], %13 {strides = array<i32>} : memref<10x10x128xf32, #tpu.memory_space<vmem>>, vector<1x10x128xf32>,
    %c9 = arith.constant 9 : index
    %c0_15 = arith.constant 0 : index
    %c0_16 = arith.constant 0 : index
    %16 = vector.load %arg12[%c9, %c0_15, %c0_16] : memref<10x10x128xf32, #tpu.memory_space<vmem>>, vector<1x10x128xf32>
    tpu.vector_store %arg12[%c9, %c0_15, %c0_16], %13 {strides = array<i32>} : memref<10x10x128xf32, #tpu.memory_space<vmem>>, vector<1x10x128xf32>,
    %c1 = arith.constant 1 : index
    %c0_17 = arith.constant 0 : index
    %c0_18 = arith.constant 0 : index
    %17 = vector.load %arg12[%c1, %c0_17, %c0_18] : memref<10x10x128xf32, #tpu.memory_space<vmem>>, vector<8x1x128xf32>
    tpu.vector_store %arg12[%c1, %c0_17, %c0_18], %14 {strides = array<i32>} : memref<10x10x128xf32, #tpu.memory_space<vmem>>, vector<8x1x128xf32>,
    %c1_19 = arith.constant 1 : index
    %c9_20 = arith.constant 9 : index
    %c0_21 = arith.constant 0 : index
    %18 = vector.load %arg12[%c1_19, %c9_20, %c0_21] : memref<10x10x128xf32, #tpu.memory_space<vmem>>, vector<8x1x128xf32>
    tpu.vector_store %arg12[%c1_19, %c9_20, %c0_21], %14 {strides = array<i32>} : memref<10x10x128xf32, #tpu.memory_space<vmem>>, vector<8x1x128xf32>,
    %19 = vector.shape_cast %12 : vector<64x128xf32> to vector<8x8x128xf32>
    %c1_22 = arith.constant 1 : index
    %c1_23 = arith.constant 1 : index
    %c0_24 = arith.constant 0 : index
    %20 = vector.load %arg12[%c1_22, %c1_23, %c0_24] : memref<10x10x128xf32, #tpu.memory_space<vmem>>, vector<8x8x128xf32>
    tpu.vector_store %arg12[%c1_22, %c1_23, %c0_24], %19 {strides = array<i32>} : memref<10x10x128xf32, #tpu.memory_space<vmem>>, vector<8x8x128xf32>,
    %c0_25 = arith.constant 0 : index
    %c0_26 = arith.constant 0 : index
    %c0_27 = arith.constant 0 : index
    %21 = vector.load %arg12[%c0_25, %c0_26, %c0_27] : memref<10x10x128xf32, #tpu.memory_space<vmem>>, vector<8x8x128xf32>
    %c0_28 = arith.constant 0 : index
    %c1_29 = arith.constant 1 : index
    %c0_30 = arith.constant 0 : index
    %22 = vector.load %arg12[%c0_28, %c1_29, %c0_30] : memref<10x10x128xf32, #tpu.memory_space<vmem>>, vector<8x8x128xf32>
    %c0_31 = arith.constant 0 : index
    %c2 = arith.constant 2 : index
    %c0_32 = arith.constant 0 : index
    %23 = vector.load %arg12[%c0_31, %c2, %c0_32] : memref<10x10x128xf32, #tpu.memory_space<vmem>>, vector<8x8x128xf32>
    %24 = tpu.concatenate %21, %22, %23 in 2 : vector<8x8x128xf32>, vector<8x8x128xf32>, vector<8x8x128xf32> -> vector<8x8x384xf32>
    %25 = arith.truncf %24 : vector<8x8x384xf32> to vector<8x8x384xbf16>
    %26 = vector.shape_cast %25 : vector<8x8x384xbf16> to vector<64x384xbf16>
    %c0_33 = arith.constant 0 : index
    %c0_34 = arith.constant 0 : index
    %c0_35 = arith.constant 0 : index
    %27 = vector.load %arg5[%c0_33, %c0_34, %c0_35] : memref<3x384x128xbf16, #tpu.memory_space<vmem>>, vector<1x384x128xbf16>
    %28 = vector.shape_cast %27 : vector<1x384x128xbf16> to vector<384x128xbf16>
    %cst_36 = arith.constant dense<0.000000e+00> : vector<64x128xf32>
    %29 = tpu.matmul %26, %28, %cst_36 {dimension_numbers = #tpu.dot_dimension_numbers<[1], [0], [0], [1], [0, 0, 1, 1], [], []>} : vector<64x384xbf16>, vector<384x128xbf16>, vector<64x128xf32> -> vector<64x128xf32>
    %c1_37 = arith.constant 1 : index
    %c0_38 = arith.constant 0 : index
    %c0_39 = arith.constant 0 : index
    %30 = vector.load %arg12[%c1_37, %c0_38, %c0_39] : memref<10x10x128xf32, #tpu.memory_space<vmem>>, vector<8x8x128xf32>
    %c1_40 = arith.constant 1 : index
    %c1_41 = arith.constant 1 : index
    %c0_42 = arith.constant 0 : index
    %31 = vector.load %arg12[%c1_40, %c1_41, %c0_42] : memref<10x10x128xf32, #tpu.memory_space<vmem>>, vector<8x8x128xf32>
    %c1_43 = arith.constant 1 : index
    %c2_44 = arith.constant 2 : index
    %c0_45 = arith.constant 0 : index
    %32 = vector.load %arg12[%c1_43, %c2_44, %c0_45] : memref<10x10x128xf32, #tpu.memory_space<vmem>>, vector<8x8x128xf32>
    %33 = tpu.concatenate %30, %31, %32 in 2 : vector<8x8x128xf32>, vector<8x8x128xf32>, vector<8x8x128xf32> -> vector<8x8x384xf32>
    %34 = arith.truncf %33 : vector<8x8x384xf32> to vector<8x8x384xbf16>
    %35 = vector.shape_cast %34 : vector<8x8x384xbf16> to vector<64x384xbf16>
    %c1_46 = arith.constant 1 : index
    %c0_47 = arith.constant 0 : index
    %c0_48 = arith.constant 0 : index
    %36 = vector.load %arg5[%c1_46, %c0_47, %c0_48] : memref<3x384x128xbf16, #tpu.memory_space<vmem>>, vector<1x384x128xbf16>
    %37 = vector.shape_cast %36 : vector<1x384x128xbf16> to vector<384x128xbf16>
    %cst_49 = arith.constant dense<0.000000e+00> : vector<64x128xf32>
    %38 = tpu.matmul %35, %37, %cst_49 {dimension_numbers = #tpu.dot_dimension_numbers<[1], [0], [0], [1], [0, 0, 1, 1], [], []>} : vector<64x384xbf16>, vector<384x128xbf16>, vector<64x128xf32> -> vector<64x128xf32>
    %39 = arith.addf %29, %38 : vector<64x128xf32>
    %c2_50 = arith.constant 2 : index
    %c0_51 = arith.constant 0 : index
    %c0_52 = arith.constant 0 : index
    %40 = vector.load %arg12[%c2_50, %c0_51, %c0_52] : memref<10x10x128xf32, #tpu.memory_space<vmem>>, vector<8x8x128xf32>
    %c2_53 = arith.constant 2 : index
    %c1_54 = arith.constant 1 : index
    %c0_55 = arith.constant 0 : index
    %41 = vector.load %arg12[%c2_53, %c1_54, %c0_55] : memref<10x10x128xf32, #tpu.memory_space<vmem>>, vector<8x8x128xf32>
    %c2_56 = arith.constant 2 : index
    %c2_57 = arith.constant 2 : index
    %c0_58 = arith.constant 0 : index
    %42 = vector.load %arg12[%c2_56, %c2_57, %c0_58] : memref<10x10x128xf32, #tpu.memory_space<vmem>>, vector<8x8x128xf32>
    %43 = tpu.concatenate %40, %41, %42 in 2 : vector<8x8x128xf32>, vector<8x8x128xf32>, vector<8x8x128xf32> -> vector<8x8x384xf32>
    %44 = arith.truncf %43 : vector<8x8x384xf32> to vector<8x8x384xbf16>
    %45 = vector.shape_cast %44 : vector<8x8x384xbf16> to vector<64x384xbf16>
    %c2_59 = arith.constant 2 : index
    %c0_60 = arith.constant 0 : index
    %c0_61 = arith.constant 0 : index
    %46 = vector.load %arg5[%c2_59, %c0_60, %c0_61] : memref<3x384x128xbf16, #tpu.memory_space<vmem>>, vector<1x384x128xbf16>
    %47 = vector.shape_cast %46 : vector<1x384x128xbf16> to vector<384x128xbf16>
    %cst_62 = arith.constant dense<0.000000e+00> : vector<64x128xf32>
    %48 = tpu.matmul %45, %47, %cst_62 {dimension_numbers = #tpu.dot_dimension_numbers<[1], [0], [0], [1], [0, 0, 1, 1], [], []>} : vector<64x384xbf16>, vector<384x128xbf16>, vector<64x128xf32> -> vector<64x128xf32>
    %49 = arith.addf %39, %48 : vector<64x128xf32>
    %c0_63 = arith.constant 0 : index
    %c0_64 = arith.constant 0 : index
    %50 = vector.load %arg6[%c0_63, %c0_64] : memref<1x128xf32, #tpu.memory_space<vmem>>, vector<1x128xf32>
    %51 = vector.broadcast %50 : vector<1x128xf32> to vector<64x128xf32>
    %52 = arith.mulf %49, %51 : vector<64x128xf32>
    %c0_65 = arith.constant 0 : index
    %c0_66 = arith.constant 0 : index
    %53 = vector.load %arg7[%c0_65, %c0_66] : memref<1x128xf32, #tpu.memory_space<vmem>>, vector<1x128xf32>
    %54 = vector.broadcast %53 : vector<1x128xf32> to vector<64x128xf32>
    %55 = arith.addf %52, %54 : vector<64x128xf32>
    %c0_67 = arith.constant 0 : index
    %c0_68 = arith.constant 0 : index
    %c0_69 = arith.constant 0 : index
    %c512 = arith.constant 512 : index
    %56 = vector.load %arg1[%c0_67, %c0_68, %c0_69, %c512] : memref<1x8x8x1152xbf16, #tpu.memory_space<vmem>>, vector<1x8x8x128xbf16>
    %57 = vector.shape_cast %56 : vector<1x8x8x128xbf16> to vector<8x8x128xbf16>
    %58 = vector.shape_cast %57 : vector<8x8x128xbf16> to vector<64x128xbf16>
    %c0_70 = arith.constant 0 : index
    %c0_71 = arith.constant 0 : index
    %59 = vector.load %arg8[%c0_70, %c0_71] : memref<128x128xbf16, #tpu.memory_space<vmem>>, vector<128x128xbf16>
    %cst_72 = arith.constant dense<0.000000e+00> : vector<64x128xf32>
    %60 = tpu.matmul %58, %59, %cst_72 {dimension_numbers = #tpu.dot_dimension_numbers<[1], [0], [0], [1], [0, 0, 1, 1], [], []>} : vector<64x128xbf16>, vector<128x128xbf16>, vector<64x128xf32> -> vector<64x128xf32>
    %c0_73 = arith.constant 0 : index
    %c0_74 = arith.constant 0 : index
    %61 = vector.load %arg9[%c0_73, %c0_74] : memref<1x128xf32, #tpu.memory_space<vmem>>, vector<1x128xf32>
    %62 = vector.broadcast %61 : vector<1x128xf32> to vector<64x128xf32>
    %63 = arith.mulf %60, %62 : vector<64x128xf32>
    %c0_75 = arith.constant 0 : index
    %c0_76 = arith.constant 0 : index
    %64 = vector.load %arg10[%c0_75, %c0_76] : memref<1x128xf32, #tpu.memory_space<vmem>>, vector<1x128xf32>
    %65 = vector.broadcast %64 : vector<1x128xf32> to vector<64x128xf32>
    %66 = arith.addf %63, %65 : vector<64x128xf32>
    %67 = arith.addf %55, %66 : vector<64x128xf32>
    %cst_77 = arith.constant 0.000000e+00 : f32
    %68 = vector.broadcast %cst_77 : f32 to vector<64x128xf32>
    %69 = arith.maximumf %67, %68 : vector<64x128xf32>
    %70 = vector.shape_cast %69 : vector<64x128xf32> to vector<8x8x128xf32>
    %c0_78 = arith.constant 0 : index
    %c0_79 = arith.constant 0 : index
    %c0_80 = arith.constant 0 : index
    %c0_81 = arith.constant 0 : index
    %71 = vector.load %arg11[%c0_78, %c0_79, %c0_80, %c0_81] : memref<1x8x8x128xf32, #tpu.memory_space<vmem>>, vector<1x8x8x128xf32>
    %72 = vector.shape_cast %71 : vector<1x8x8x128xf32> to vector<8x8x128xf32>
    %73 = vector.shape_cast %70 : vector<8x8x128xf32> to vector<1x8x8x128xf32>
    tpu.vector_store %arg11[%c0_78, %c0_79, %c0_80, %c0_81], %73 {strides = array<i32>} : memref<1x8x8x128xf32, #tpu.memory_space<vmem>>, vector<1x8x8x128xf32>,
    return
  }
  func.func @transform_0(%arg0: i32) -> (i32, i32, i32, i32) {
    %c0_i32 = arith.constant 0 : i32
    %c0_i32_0 = arith.constant 0 : i32
    %c0_i32_1 = arith.constant 0 : i32
    %c0_i32_2 = arith.constant 0 : i32
    return %arg0, %c0_i32, %c0_i32_0, %c0_i32_1 : i32, i32, i32, i32
  }
  func.func @transform_1(%arg0: i32) -> (i32, i32) {
    %c0_i32 = arith.constant 0 : i32
    %c0_i32_0 = arith.constant 0 : i32
    %c0_i32_1 = arith.constant 0 : i32
    return %c0_i32, %c0_i32_0 : i32, i32
  }
  func.func @transform_2(%arg0: i32) -> (i32, i32) {
    %c0_i32 = arith.constant 0 : i32
    %c0_i32_0 = arith.constant 0 : i32
    %c0_i32_1 = arith.constant 0 : i32
    return %c0_i32, %c0_i32_0 : i32, i32
  }
  func.func @transform_3(%arg0: i32) -> (i32, i32) {
    %c0_i32 = arith.constant 0 : i32
    %c0_i32_0 = arith.constant 0 : i32
    %c0_i32_1 = arith.constant 0 : i32
    return %c0_i32, %c0_i32_0 : i32, i32
  }
  func.func @transform_4(%arg0: i32) -> (i32, i32, i32) {
    %c0_i32 = arith.constant 0 : i32
    %c0_i32_0 = arith.constant 0 : i32
    %c0_i32_1 = arith.constant 0 : i32
    %c0_i32_2 = arith.constant 0 : i32
    return %c0_i32, %c0_i32_0, %c0_i32_1 : i32, i32, i32
  }
  func.func @transform_5(%arg0: i32) -> (i32, i32) {
    %c0_i32 = arith.constant 0 : i32
    %c0_i32_0 = arith.constant 0 : i32
    %c0_i32_1 = arith.constant 0 : i32
    return %c0_i32, %c0_i32_0 : i32, i32
  }
  func.func @transform_6(%arg0: i32) -> (i32, i32) {
    %c0_i32 = arith.constant 0 : i32
    %c0_i32_0 = arith.constant 0 : i32
    %c0_i32_1 = arith.constant 0 : i32
    return %c0_i32, %c0_i32_0 : i32, i32
  }
  func.func @transform_7(%arg0: i32) -> (i32, i32) {
    %c0_i32 = arith.constant 0 : i32
    %c0_i32_0 = arith.constant 0 : i32
    %c0_i32_1 = arith.constant 0 : i32
    return %c0_i32, %c0_i32_0 : i32, i32
  }
  func.func @transform_8(%arg0: i32) -> (i32, i32) {
    %c0_i32 = arith.constant 0 : i32
    %c0_i32_0 = arith.constant 0 : i32
    %c0_i32_1 = arith.constant 0 : i32
    return %c0_i32, %c0_i32_0 : i32, i32
  }
  func.func @transform_9(%arg0: i32) -> (i32, i32) {
    %c0_i32 = arith.constant 0 : i32
    %c0_i32_0 = arith.constant 0 : i32
    %c0_i32_1 = arith.constant 0 : i32
    return %c0_i32, %c0_i32_0 : i32, i32
  }
  func.func @transform_10(%arg0: i32) -> (i32, i32, i32, i32) {
    %c0_i32 = arith.constant 0 : i32
    %c0_i32_0 = arith.constant 0 : i32
    %c0_i32_1 = arith.constant 0 : i32
    %c0_i32_2 = arith.constant 0 : i32
    return %arg0, %c0_i32, %c0_i32_0, %c0_i32_1 : i32, i32, i32, i32
  }
}

</mosaic_0001>

<bundles_post_ra>
// kernel: basic_block_forward.1
= control target key start
LH: loop header
LB: loop body
LE: loop exit
PB: predicated region body
PF: predicated region fallthrough
CT: control target
= control target key end

     0   :  { %s4350_s13 = smov 0   ;;  %s5018_s0 = inlined_call_operand.vmem [shape: bf16[2,8,8,1152], index: 0, kind: input, shape index: {}]   ;;  %s5019_s1 = inlined_call_operand.vmem [shape: bf16[1152,128], index: 1, kind: input, shape index: {}]   ;;  %s5020_s2 = inlined_call_operand.vmem [shape: f32[1,128], index: 2, kind: input, shape index: {}]   ;;  %s5021_s3 = inlined_call_operand.vmem [shape: f32[1,128], index: 3, kind: input, shape index: {}]   ;;  %s5022_s4 = inlined_call_operand.vmem [shape: bf16[3,384,128], index: 4, kind: input, shape index: {}]   ;;  %s5023_s5 = inlined_call_operand.vmem [shape: f32[1,128], index: 5, kind: input, shape index: {}]   ;;  %s5024_s6 = inlined_call_operand.vmem [shape: f32[1,128], index: 6, kind: input, shape index: {}]   ;;  %s5025_s7 = inlined_call_operand.vmem [shape: bf16[128,128], index: 7, kind: input, shape index: {}]   ;;  %s5026_s8 = inlined_call_operand.vmem [shape: f32[1,128], index: 8, kind: input, shape index: {}]   ;;  %s5027_s9 = inlined_call_operand.vmem [shape: f32[1,128], index: 9, kind: input, shape index: {}]   ;;  %s5028_s10 = inlined_call_operand.vmem [shape: f32[2,8,8,128], index: 10, kind: output, shape index: {}]  }
   0x1 LB: > { %s3191_s14 = sadd.s32 4294967295, %s4292_s13   ;;  %p3195_p0 = scmp.ge.s32.totalorder %s4292_s13, 1  ;;  %s4292_s13 = sphi %s4350_s13, %s20_s13  }
   0x2   : > { %p312_p1 = scmp.lt.s32.totalorder %s4292_s13, 3 }
   0x4   : > { %p313_p2 = pnand %p3195_p0, %p312_p1 }
   0x5   : > { %v4078_v0 = vld [vmem:[%s5019_s1 + $0x40] sm:$0xff] (!%p313_p2)   ;;  %v4082_v4 = vld [vmem:[%s5019_s1 + $0x48] sm:$0xff] (!%p313_p2)   ;;  %v4086_v8 = vld [vmem:[%s5019_s1 + $0x50] sm:$0xff] (!%p313_p2)   ;;  %p350_p3 = scmp.lt.s32.totalorder (!%p313_p2), %s3191_s14, 1 }
   0x6   : > { %316 = sbr.rel (%p313_p2) target bundleno = 667 (0x29b), region = 60  ;;  %v4079_v1 = vld [vmem:[%s5019_s1 + $0xc0] sm:$0xff] (!%p313_p2)   ;;  %3568 = vmatprep.subr.bf16.mxu0 (!%p313_p2), %v4078_v0  ;;  %v4083_v5 = vld [vmem:[%s5019_s1 + $0xc8] sm:$0xff] (!%p313_p2)   ;;  %v4087_v9 = vld [vmem:[%s5019_s1 + $0xd0] sm:$0xff] (!%p313_p2)  }
   0x7   : > { %v4080_v2 = vld [vmem:[%s5019_s1] sm:$0xff] (!%p313_p2)   ;;  %3608 = vmatprep.subr.bf16.mxu1 (!%p313_p2), %v4079_v1  ;;  %v4084_v6 = vld [vmem:[%s5019_s1 + $0x8] sm:$0xff] (!%p313_p2)   ;;  %v4088_v10 = vld [vmem:[%s5019_s1 + $0x10] sm:$0xff] (!%p313_p2)  }
   0x8   : > { %v4081_v3 = vld [vmem:[%s5019_s1 + $0x80] sm:$0xff] (!%p313_p2)   ;;  %3569 = vmatpush3.bf16.msra.mxu0 (!%p313_p2), %v4080_v2  ;;  %v4085_v7 = vld [vmem:[%s5019_s1 + $0x88] sm:$0xff] (!%p313_p2)   ;;  %v4089_v11 = vld [vmem:[%s5019_s1 + $0x90] sm:$0xff] (!%p313_p2)  }
   0x9   : > { %3609 = vmatpush3.bf16.msra.mxu1 (!%p313_p2), %v4081_v3  ;;  %3570 = vmatprep.subr.bf16.mxu0 (!%p313_p2), %v4082_v4  ;;  %v4090_v12 = vld [vmem:[%s5019_s1 + $0x58] sm:$0xff] (!%p313_p2)   ;;  %v4094_v16 = vld [vmem:[%s5019_s1 + $0x60] sm:$0xff] (!%p313_p2)   ;;  %v4098_v20 = vld [vmem:[%s5019_s1 + $0x68] sm:$0xff] (!%p313_p2)  }
   0xa   : > { %3610 = vmatprep.subr.bf16.mxu1 (!%p313_p2), %v4083_v5  ;;  %v4091_v13 = vld [vmem:[%s5019_s1 + $0xd8] sm:$0xff] (!%p313_p2)   ;;  %v4095_v17 = vld [vmem:[%s5019_s1 + $0xe0] sm:$0xff] (!%p313_p2)   ;;  %v4099_v21 = vld [vmem:[%s5019_s1 + $0xe8] sm:$0xff] (!%p313_p2)  }
   0xb   : > { %v4092_v14 = vld [vmem:[%s5019_s1 + $0x18] sm:$0xff] (!%p313_p2)   ;;  %v4096_v18 = vld [vmem:[%s5019_s1 + $0x20] sm:$0xff] (!%p313_p2)   ;;  %v4100_v22 = vld [vmem:[%s5019_s1 + $0x28] sm:$0xff] (!%p313_p2)  }
   0xc   : > { %3571 = vmatpush3.bf16.msra.mxu0 (!%p313_p2), %v4084_v6  ;;  %v4093_v15 = vld [vmem:[%s5019_s1 + $0x98] sm:$0xff] (!%p313_p2)   ;;  %v4097_v19 = vld [vmem:[%s5019_s1 + $0xa0] sm:$0xff] (!%p313_p2)   ;;  %v4101_v23 = vld [vmem:[%s5019_s1 + $0xa8] sm:$0xff] (!%p313_p2)  }
   0xd   : > { %3611 = vmatpush3.bf16.msra.mxu1 %v4085_v7  ;;  %3572 = vmatprep.subr.bf16.mxu0 %v4086_v8  ;;  %s5030_s14 = smov (!%p350_p3, %s3191_s14), 1  ;;  %v4102_v24 = vld [vmem:[%s5019_s1 + $0x70] sm:$0xff]   ;;  %v4106_v28 = vld [vmem:[%s5019_s1 + $0x78] sm:$0xff]   ;;  %v4116_v36 = vld [vmem:[%s5019_s1 + $0x140] sm:$0xff]  }
   0xe   : > { %3612 = vmatprep.subr.bf16.mxu1 %v4087_v9  ;;  %v4103_v25 = vld [vmem:[%s5019_s1 + $0xf0] sm:$0xff]   ;;  %s4068_s11 = smul.u32 288, %s5030_s14  ;;  %v4107_v29 = vld [vmem:[%s5019_s1 + $0xf8] sm:$0xff]   ;;  %v4117_v37 = vld [vmem:[%s5019_s1 + $0x100] sm:$0xff]   ;;  %s3531_s25 = sshll.u32 %s5030_s14, 6 }
   0xf   : > { %v4104_v26 = vld [vmem:[%s5019_s1 + $0x30] sm:$0xff]   ;;  %v4108_v30 = vld [vmem:[%s5019_s1 + $0x38] sm:$0xff]   ;;  %v4118_v38 = vld [vmem:[%s5019_s1 + $0x1c0] sm:$0xff]   ;;  %s5005_s28 = scalar_lea.vmem %s5028_s10, %s3531_s25 }
  0x10   : > { %3573 = vmatpush3.bf16.msra.mxu0 %v4088_v10  ;;  %v4105_v27 = vld [vmem:[%s5019_s1 + $0xb0] sm:$0xff]   ;;  %s4458_s24 = scalar_lea.vmem %s5018_s0, %s4068_s11  ;;  %v4109_v31 = vld [vmem:[%s5019_s1 + $0xb8] sm:$0xff]   ;;  %v4119_v39 = vld [vmem:[%s5019_s1 + $0x180] sm:$0xff]  }
  0x11   : > { %3613 = vmatpush3.bf16.msra.mxu1 %v4089_v11  ;;  %3574 = vmatprep.subr.bf16.mxu0 %v4090_v12  ;;  %v4110_v32 = vld [vmem:[%s4458_s24] ss:$36 sps:$4 sm:$0xff]   ;;  %v4113_v34 = vld [vmem:[%s4458_s24 + $0x8] ss:$36 sps:$4 sm:$0xff]   ;;  %v4125_v44 = vld [vmem:[%s4458_s24 + $0x54] ss:$36 sps:$4 sm:$0xff]  }
  0x12   : > { %3614 = vmatprep.subr.bf16.mxu1 %v4091_v13  ;;  %v4112_v33 = vld [vmem:[%s4458_s24 + $0x4] ss:$36 sps:$4 sm:$0xff]   ;;  %v4115_v35 = vld [vmem:[%s4458_s24 + $0xc] ss:$36 sps:$4 sm:$0xff]   ;;  %v4134_v52 = vld [vmem:[%s5019_s1 + $0x158] sm:$0xff]  }
  0x13   : > { %1193 = vmatprep.mubr.bf16.mxu0 %v4112_v33  ;;  %1258 = vmatprep.mubr.bf16.mxu1 %v4115_v35  ;;  %v4120_v40 = vld [vmem:[%s5019_s1 + $0x148] sm:$0xff]   ;;  %v4129_v47 = vld [vmem:[%s4458_s24 + $0x50] ss:$36 sps:$4 sm:$0xff]   ;;  %v4135_v53 = vld [vmem:[%s5019_s1 + $0x118] sm:$0xff]  }
  0x14   : > { %3575 = vmatpush3.bf16.msra.mxu0 %v4092_v14  ;;  %v4121_v41 = vld [vmem:[%s5019_s1 + $0x108] sm:$0xff]   ;;  %v4130_v48 = vld [vmem:[%s5019_s1 + $0x150] sm:$0xff]   ;;  %v4136_v54 = vld [vmem:[%s5019_s1 + $0x1d8] sm:$0xff]  }
  0x15   : > { %3615 = vmatpush3.bf16.msra.mxu1 %v4093_v15  ;;  %3576 = vmatprep.subr.bf16.mxu0 %v4094_v16  ;;  %v4122_v42 = vld [vmem:[%s5019_s1 + $0x1c8] sm:$0xff]   ;;  %v4131_v49 = vld [vmem:[%s5019_s1 + $0x110] sm:$0xff]   ;;  %v4139_v56 = vld [vmem:[%s4458_s24 + $0x9c] ss:$36 sps:$4 sm:$0xff]  }
  0x16   : > { %3616 = vmatprep.subr.bf16.mxu1 %v4095_v17  ;;  %v4123_v43 = vld [vmem:[%s4458_s24 + $0x4c] ss:$36 sps:$4 sm:$0xff]   ;;  %v4137_v55 = vld [vmem:[%s4458_s24 + $0x94] ss:$36 sps:$4 sm:$0xff]   ;;  %v4144_v60 = vld [vmem:[%s5019_s1 + $0x160] sm:$0xff]  }
  0x17   : > { %v4127_v45 = vld [vmem:[%s5019_s1 + $0x188] sm:$0xff]   ;;  %v4132_v50 = vld [vmem:[%s5019_s1 + $0x1d0] sm:$0xff]   ;;  %v4141_v57 = vld [vmem:[%s5019_s1 + $0x198] sm:$0xff]  }
  0x18   : > { %3577 = vmatpush3.bf16.msra.mxu0 %v4096_v18  ;;  %v4128_v46 = vld [vmem:[%s4458_s24 + $0x48] ss:$36 sps:$4 sm:$0xff]   ;;  %v4133_v51 = vld [vmem:[%s5019_s1 + $0x190] sm:$0xff]   ;;  %v4143_v59 = vld [vmem:[%s4458_s24 + $0x98] ss:$36 sps:$4 sm:$0xff]  }
  0x19   : > { %3617 = vmatpush3.bf16.msra.mxu1 %v4097_v19  ;;  %3578 = vmatprep.subr.bf16.mxu0 %v4098_v20  ;;  %v4142_v58 = vld [vmem:[%s4458_s24 + $0x90] ss:$36 sps:$4 sm:$0xff]   ;;  %v4145_v61 = vld [vmem:[%s5019_s1 + $0x120] sm:$0xff]   ;;  %v4148_v0 = vld [vmem:[%s5019_s1 + $0x168] sm:$0xff]  }
  0x1a   : > { %3618 = vmatprep.subr.bf16.mxu1 %v4099_v21  ;;  %v4146_v62 = vld [vmem:[%s5019_s1 + $0x1e0] sm:$0xff]   ;;  %v4149_v1 = vld [vmem:[%s5019_s1 + $0x128] sm:$0xff]   ;;  %v4156_v6 = vld [vmem:[%s4458_s24 + $0xd8] ss:$36 sps:$4 sm:$0xff]  }
  0x1b   : > { %v4147_v63 = vld [vmem:[%s5019_s1 + $0x1a0] sm:$0xff]   ;;  %v4150_v2 = vld [vmem:[%s5019_s1 + $0x1e8] sm:$0xff]   ;;  %v4158_v8 = vld [vmem:[%s5019_s1 + $0x170] sm:$0xff]  }
  0x1c   : > { %3579 = vmatpush3.bf16.msra.mxu0 %v4100_v22  ;;  %v4151_v3 = vld [vmem:[%s4458_s24 + $0xdc] ss:$36 sps:$4 sm:$0xff]   ;;  %v4153_v4 = vld [vmem:[%s4458_s24 + $0xe4] ss:$36 sps:$4 sm:$0xff]   ;;  %v4159_v9 = vld [vmem:[%s5019_s1 + $0x130] sm:$0xff]  }
  0x1d   : > { %3619 = vmatpush3.bf16.msra.mxu1 %v4101_v23  ;;  %3580 = vmatprep.subr.bf16.mxu0 %v4102_v24  ;;  %v4155_v5 = vld [vmem:[%s5019_s1 + $0x1a8] sm:$0xff]   ;;  %v4157_v7 = vld [vmem:[%s4458_s24 + $0xe0] ss:$36 sps:$4 sm:$0xff]   ;;  %v4160_v10 = vld [vmem:[%s5019_s1 + $0x1f0] sm:$0xff]  }
  0x1e   : > { %3620 = vmatprep.subr.bf16.mxu1 %v4103_v25  ;;  %v4161_v11 = vld [vmem:[%s5019_s1 + $0x1b0] sm:$0xff]   ;;  %v4162_v12 = vld [vmem:[%s5019_s1 + $0x178] sm:$0xff]   ;;  %v4169_v18 = vld [vmem:[%s5019_s1 + $0x200] sm:$0xff]  }
  0x1f   : > { %v4163_v13 = vld [vmem:[%s5019_s1 + $0x138] sm:$0xff]   ;;  %v4165_v15 = vld [vmem:[%s4458_s24 + $0x10] ss:$36 sps:$4 sm:$0xff]   ;;  %v4173_v21 = vld [vmem:[%s5019_s1 + $0x208] sm:$0xff]  }
  0x20   : > { %3581 = vmatpush3.bf16.msra.mxu0 %v4104_v26  ;;  %v4164_v14 = vld [vmem:[%s5019_s1 + $0x1f8] sm:$0xff]   ;;  %v4177_v24 = vld [vmem:[%s5019_s1 + $0x210] sm:$0xff]   ;;  %v4178_v25 = vld [vmem:[%s4458_s24 + $0x64] ss:$36 sps:$4 sm:$0xff]  }
  0x21   : > { %3621 = vmatpush3.bf16.msra.mxu1 %v4105_v27  ;;  %3582 = vmatprep.subr.bf16.mxu0 %v4106_v28  ;;  %v4167_v16 = vld [vmem:[%s4458_s24 + $0x14] ss:$36 sps:$4 sm:$0xff]   ;;  %v4172_v20 = vld [vmem:[%s4458_s24 + $0x1c] ss:$36 sps:$4 sm:$0xff]   ;;  %v4182_v27 = vld [vmem:[%s4458_s24 + $0xa4] ss:$36 sps:$4 sm:$0xff]  }
  0x22   : > { %3622 = vmatprep.subr.bf16.mxu1 %v4107_v29  ;;  %v4168_v17 = vld [vmem:[%s5019_s1 + $0x1b8] sm:$0xff]   ;;  %v4180_v28 = vld [vmem:[%s4458_s24 + $0x60] ss:$36 sps:$4 sm:$0xff]   ;;  %v4186_v29 = vld [vmem:[%s4458_s24 + $0xac] ss:$36 sps:$4 sm:$0xff]  }
  0x23   : > { %v4170_v19 = vld [vmem:[%s4458_s24 + $0x18] ss:$36 sps:$4 sm:$0xff]   ;;  %v4189_v33 = vld [vmem:[%s5019_s1 + $0x228] sm:$0xff]  }
  0x24   : > { %3583 = vmatpush3.bf16.msra.mxu0 %v4108_v30  ;;  %v4174_v22 = vld [vmem:[%s4458_s24 + $0x5c] ss:$36 sps:$4 sm:$0xff]   ;;  %v4194_v35 = vld [vmem:[%s4458_s24 + $0xf4] ss:$36 sps:$4 sm:$0xff]  }
  0x25   : > { %3623 = vmatpush3.bf16.msra.mxu1 %v4109_v31  ;;  %3648 = vmatprep.subr.bf16.mxu0 %v4116_v36  ;;  %v4176_v23 = vld [vmem:[%s4458_s24 + $0x58] ss:$36 sps:$4 sm:$0xff]   ;;  %v4185_v30 = vld [vmem:[%s5019_s1 + $0x220] sm:$0xff]   ;;  %v4192_v36 = vld [vmem:[%s4458_s24 + $0xe8] ss:$36 sps:$4 sm:$0xff]  }
  0x26   : > { %3688 = vmatprep.subr.bf16.mxu1 %v4118_v38  ;;  %v4181_v26 = vld [vmem:[%s5019_s1 + $0x218] sm:$0xff]   ;;  %v4184_v31 = vld [vmem:[%s4458_s24 + $0xa0] ss:$36 sps:$4 sm:$0xff]  }
  0x27   : > { %1194 = vmatmul.mubr.bf16.vlgmr.msra.gmra.mrb[0].mxu0 %v4110_v32  ;;  %v4190_v32 = vld [vmem:[%s4458_s24 + $0xec] ss:$36 sps:$4 sm:$0xff]   ;;  %v4198_v38 = vld [vmem:[%s4458_s24 + $0x20] ss:$36 sps:$4 sm:$0xff]  }
  0x28   : > { %1259 = vmatmul.mubr.bf16.vlgmr.msra.gmra.mrb[0].mxu1 %v4113_v34  ;;  %3649 = vmatpush3.bf16.msra.mxu0 %v4117_v37  ;;  %v4188_v34 = vld [vmem:[%s4458_s24 + $0xa8] ss:$36 sps:$4 sm:$0xff]   ;;  %v4193_v37 = vld [vmem:[%s5019_s1 + $0x230] sm:$0xff]  }
  0x29   : > { %3689 = vmatpush3.bf16.msra.mxu1 %v4119_v39  ;;  %3650 = vmatprep.subr.bf16.mxu0 %v4120_v40  ;;  %v4197_v39 = vld [vmem:[%s5019_s1 + $0x238] sm:$0xff]   ;;  %v4196_v40 = vld [vmem:[%s4458_s24 + $0xf0] ss:$36 sps:$4 sm:$0xff]  }
  0x2a   : > { %3690 = vmatprep.subr.bf16.mxu1 %v4122_v42  ;;  %1201 = vmatprep.mubr.bf16.mxu0 %v4123_v43  ;;  %v4200_v42 = vld [vmem:[%s4458_s24 + $0xb0] ss:$36 sps:$4 sm:$0xff]   ;;  %v4201_v43 = vld [vmem:[%s4458_s24 + $0xf8] ss:$36 sps:$4 sm:$0xff]  }
  0x2b   : > { %1266 = vmatprep.mubr.bf16.mxu1 %v4125_v44  ;;  %v4202_v44 = vld [vmem:[%s5022_s4 + $0x140] sm:$0xff]  }
  0x2c   : > { %3651 = vmatpush3.bf16.msra.mxu0 %v4121_v41  ;;  %v4199_v41 = vld [vmem:[%s4458_s24 + $0x68] ss:$36 sps:$4 sm:$0xff]  }
  0x2d   : > { %3691 = vmatpush3.bf16.msra.mxu1 %v4127_v45  ;;  %3652 = vmatprep.subr.bf16.mxu0 %v4130_v48  ;;  %v4203_v45 = vld [vmem:[%s5022_s4 + $0x100] sm:$0xff]   ;;  %v4206_v48 = vld [vmem:[%s5022_s4 + $0x108] sm:$0xff]  }
  0x2e   : > { %3692 = vmatprep.subr.bf16.mxu1 %v4132_v50  ;;  %v4208_v50 = vld [vmem:[%s5022_s4 + $0x150] sm:$0xff]  }
  0x2f   : > { %1202 = vmatmul.mubr.bf16.gmra.mrb[4].mxu0 %v4128_v46  ;;  %v4204_v46 = vld [vmem:[%s5022_s4 + $0xc0] sm:$0xff]  }
  0x30   : > { %1267 = vmatmul.mubr.bf16.gmra.mrb[4].mxu1 %v4129_v47  ;;  %3653 = vmatpush3.bf16.msra.mxu0 %v4131_v49  ;;  %v4205_v47 = vld [vmem:[%s5022_s4 + $0x148] sm:$0xff]  }
  0x31   : > { %3693 = vmatpush3.bf16.msra.mxu1 %v4133_v51  ;;  %3654 = vmatprep.subr.bf16.mxu0 %v4134_v52  ;;  %v4207_v49 = vld [vmem:[%s5022_s4 + $0xc8] sm:$0xff]   ;;  %v4209_v51 = vld [vmem:[%s5022_s4 + $0x110] sm:$0xff]  }
  0x32   : > { %3694 = vmatprep.subr.bf16.mxu1 %v4136_v54  ;;  %1209 = vmatprep.mubr.bf16.mxu0 %v4137_v55  ;;  %v4210_v52 = vld [vmem:[%s5022_s4 + $0xd0] sm:$0xff]   ;;  %v4212_v54 = vld [vmem:[%s5022_s4 + $0x118] sm:$0xff]  }
  0x33   : > { %1274 = vmatprep.mubr.bf16.mxu1 %v4139_v56  ;;  %v4213_v55 = vld [vmem:[%s5022_s4 + $0xd8] sm:$0xff]   ;;  %v4294_v56 = vmov 0.0  }
  0x34   : > { %3655 = vmatpush3.bf16.msra.mxu0 %v4135_v53  ;;  %v4211_v53 = vld [vmem:[%s5022_s4 + $0x158] sm:$0xff]   ;;  %1538 = vst [vmem:[#allocation2 + $0x19] sm:$0x1] %v4294_v56  ;;  %1539 = vst [vmem:[#allocation2 + $0x29] sm:$0x1] %v4294_v56 }
  0x35   : > { %3695 = vmatpush3.bf16.msra.mxu1 %v4141_v57  ;;  %3656 = vmatprep.subr.bf16.mxu0 %v4144_v60  ;;  %1524 = vst [vmem:[#allocation2] sm:$0xff] %v4294_v56  ;;  %1525 = vst [vmem:[#allocation2 + $0x8] sm:$0x3] %v4294_v56  ;;  %v4214_v57 = vld [vmem:[%s5022_s4 + $0x160] sm:$0xff]   ;;  %v4217_v60 = vld [vmem:[%s5022_s4 + $0x168] sm:$0xff]  }
  0x36   : > { %3696 = vmatprep.subr.bf16.mxu1 %v4146_v62  ;;  %1527 = vst [vmem:[#allocation2 + $0x90] sm:$0xff] %v4294_v56  ;;  %1528 = vst [vmem:[#allocation2 + $0x98] sm:$0x3] %v4294_v56  ;;  %v4219_v62 = vld [vmem:[%s5022_s4 + $0xe8] sm:$0xff]  }
  0x37   : > { %1210 = vmatmul.mubr.bf16.gmra.mrb[8].mxu0 %v4142_v58  ;;  %1530 = vst [vmem:[#allocation2 + $0x10] sm:$0x1] %v4294_v56  ;;  %1531 = vst [vmem:[#allocation2 + $0x20] sm:$0x1] %v4294_v56  ;;  %v4215_v58 = vld [vmem:[%s5022_s4 + $0x120] sm:$0xff]  }
  0x38   : > { %1275 = vmatmul.mubr.bf16.gmra.mrb[8].mxu1 %v4143_v59  ;;  %3657 = vmatpush3.bf16.msra.mxu0 %v4145_v61  ;;  %1532 = vst [vmem:[#allocation2 + $0x30] sm:$0x1] %v4294_v56  ;;  %1533 = vst [vmem:[#allocation2 + $0x40] sm:$0x1] %v4294_v56  ;;  %v4216_v59 = vld [vmem:[%s5022_s4 + $0xe0] sm:$0xff]   ;;  %v4218_v61 = vld [vmem:[%s5022_s4 + $0x128] sm:$0xff]  }
  0x39   : > { %3697 = vmatpush3.bf16.msra.mxu1 %v4147_v63  ;;  %3658 = vmatprep.subr.bf16.mxu0 %v4148_v0  ;;  %1534 = vst [vmem:[#allocation2 + $0x50] sm:$0x1] %v4294_v56  ;;  %1535 = vst [vmem:[#allocation2 + $0x60] sm:$0x1] %v4294_v56  ;;  %v4220_v63 = vld [vmem:[%s5022_s4 + $0x170] sm:$0xff]  }
  0x3a   : > { %3698 = vmatprep.subr.bf16.mxu1 %v4150_v2  ;;  %1217 = vmatprep.mubr.bf16.mxu0 %v4151_v3  ;;  %1536 = vst [vmem:[#allocation2 + $0x70] sm:$0x1] %v4294_v56  ;;  %1537 = vst [vmem:[#allocation2 + $0x80] sm:$0x1] %v4294_v56  ;;  %v4221_v0 = vld [vmem:[%s5022_s4 + $0x130] sm:$0xff]   ;;  %v4223_v2 = vld [vmem:[%s5022_s4 + $0x178] sm:$0xff]  }
  0x3b   : > { %1282 = vmatprep.mubr.bf16.mxu1 %v4153_v4  ;;  %1540 = vst [vmem:[#allocation2 + $0x39] sm:$0x1] %v4294_v56  ;;  %1541 = vst [vmem:[#allocation2 + $0x49] sm:$0x1] %v4294_v56  ;;  %v4224_v3 = vld [vmem:[%s5022_s4 + $0x138] sm:$0xff]  }
  0x3c   : > { %3659 = vmatpush3.bf16.msra.mxu0 %v4149_v1  ;;  %1542 = vst [vmem:[#allocation2 + $0x59] sm:$0x1] %v4294_v56  ;;  %1543 = vst [vmem:[#allocation2 + $0x69] sm:$0x1] %v4294_v56  ;;  %v4222_v1 = vld [vmem:[%s5022_s4 + $0xf0] sm:$0xff]   ;;  %v4225_v4 = vld [vmem:[%s5022_s4 + $0xf8] sm:$0xff]  }
  0x3d   : > { %3699 = vmatpush3.bf16.msra.mxu1 %v4155_v5  ;;  %3660 = vmatprep.subr.bf16.mxu0 %v4158_v8  ;;  %1544 = vst [vmem:[#allocation2 + $0x79] sm:$0x1] %v4294_v56  ;;  %1545 = vst [vmem:[#allocation2 + $0x89] sm:$0x1] %v4294_v56  ;;  %v4717_v5 = vld [vmem:[%s5022_s4 + $0x80] sm:$0xff]  }
  0x3e   : > { %3700 = vmatprep.subr.bf16.mxu1 %v4160_v10 }
  0x3f   : > { %1218 = vmatmul.mubr.bf16.gmra.mrb[12].mxu0 %v4156_v6  ;;  %v4227_v6 = vld [vmem:[%s5022_s4 + $0x40] sm:$0xff]  }
  0x40   : > { %1283 = vmatmul.mubr.bf16.gmra.mrb[12].mxu1 %v4157_v7  ;;  %3661 = vmatpush3.bf16.msra.mxu0 %v4159_v9 }
  0x41   : > { %3701 = vmatpush3.bf16.msra.mxu1 %v4161_v11  ;;  %3662 = vmatprep.subr.bf16.mxu0 %v4162_v12 }
  0x42   : > { %3702 = vmatprep.subr.bf16.mxu1 %v4164_v14  ;;  %1323 = vmatprep.mubr.bf16.mxu0 %v4167_v16 }
  0x43   : > { %1388 = vmatprep.mubr.bf16.mxu1 %v4172_v20 }
  0x44   : > { %3663 = vmatpush3.bf16.msra.mxu0 %v4163_v13 }
  0x45   : > { %3703 = vmatpush3.bf16.msra.mxu1 %v4168_v17  ;;  %3908 = vmatprep.subr.bf16.mxu0 %v4169_v18 }
  0x46   : > { %3740 = vmatprep.subr.bf16.mxu1 %v4203_v45 }
  0x47   : > { %1324 = vmatmul.mubr.bf16.vlgmr.msra.gmra.mrb[16].mxu0 %v4165_v15 }
  0x48   : > { %3909 = vmatpush3.bf16.msra.mxu0 %v4169_v18  ;;  %1389 = vmatmul.mubr.bf16.vlgmr.msra.gmra.mrb[16].mxu1 %v4170_v19 }
  0x49   : > { %3910 = vmatprep.subr.bf16.mxu0 %v4173_v21  ;;  %1331 = vmatprep.mubr.bf16.mxu0 %v4174_v22 }
  0x4a   : > { %1396 = vmatprep.mubr.bf16.mxu1 %v4178_v25  ;;  %3741 = vmatpush3.bf16.msra.mxu1 %v4204_v46 }
  0x4b   : > { %3742 = vmatprep.subr.bf16.mxu1 %v4206_v48 }
  0x4c   : > { %3911 = vmatpush3.bf16.msra.mxu0 %v4173_v21 }
  0x4d   : > { %3912 = vmatprep.subr.bf16.mxu0 %v4177_v24 }
  0x4e   : > { %3743 = vmatpush3.bf16.msra.mxu1 %v4207_v49 }
  0x4f   : > { %1332 = vmatmul.mubr.bf16.gmra.mrb[20].mxu0 %v4176_v23  ;;  %3744 = vmatprep.subr.bf16.mxu1 %v4209_v51 }
  0x50   : > { %1339 = vmatprep.mubr.bf16.mxu0 %v4182_v27  ;;  %3913 = vmatpush3.bf16.msra.mxu0 %v4177_v24 }
  0x51   : > { %3914 = vmatprep.subr.bf16.mxu0 %v4181_v26  ;;  %1397 = vmatmul.mubr.bf16.gmra.mrb[20].mxu1 %v4180_v28 }
  0x52   : > { %1404 = vmatprep.mubr.bf16.mxu1 %v4186_v29  ;;  %3745 = vmatpush3.bf16.msra.mxu1 %v4210_v52 }
  0x53   : > { %3746 = vmatprep.subr.bf16.mxu1 %v4212_v54 }
  0x54   : > { %3915 = vmatpush3.bf16.msra.mxu0 %v4181_v26 }
  0x55   : > { %3916 = vmatprep.subr.bf16.mxu0 %v4185_v30 }
  0x56   : > { %3747 = vmatpush3.bf16.msra.mxu1 %v4213_v55 }
  0x57   : > { %1340 = vmatmul.mubr.bf16.gmra.mrb[24].mxu0 %v4184_v31  ;;  %3748 = vmatprep.subr.bf16.mxu1 %v4215_v58 }
  0x58   : > { %1347 = vmatprep.mubr.bf16.mxu0 %v4190_v32  ;;  %3917 = vmatpush3.bf16.msra.mxu0 %v4185_v30 }
  0x59   : > { %3918 = vmatprep.subr.bf16.mxu0 %v4189_v33  ;;  %1405 = vmatmul.mubr.bf16.gmra.mrb[24].mxu1 %v4188_v34 }
  0x5a   : > { %1412 = vmatprep.mubr.bf16.mxu1 %v4194_v35  ;;  %3749 = vmatpush3.bf16.msra.mxu1 %v4216_v59 }
  0x5b   : > { %3750 = vmatprep.subr.bf16.mxu1 %v4218_v61 }
  0x5c   : > { %3919 = vmatpush3.bf16.msra.mxu0 %v4189_v33 }
  0x5d   : > { %3920 = vmatprep.subr.bf16.mxu0 %v4193_v37 }
  0x5e   : > { %3751 = vmatpush3.bf16.msra.mxu1 %v4219_v62 }
  0x5f   : > { %1348 = vmatmul.mubr.bf16.gmra.mrb[28].mxu0 %v4192_v36  ;;  %3752 = vmatprep.subr.bf16.mxu1 %v4221_v0 }
  0x60   : > { %3924 = vmatprep.mubr.bf16.mxu0 %v4198_v38  ;;  %3921 = vmatpush3.bf16.msra.mxu0 %v4193_v37 }
  0x61   : > { %3922 = vmatprep.subr.bf16.mxu0 %v4197_v39  ;;  %1413 = vmatmul.mubr.bf16.gmra.mrb[28].mxu1 %v4196_v40 }
  0x62   : > { %3753 = vmatpush3.bf16.msra.mxu1 %v4222_v1 }
  0x63   : > { %3754 = vmatprep.subr.bf16.mxu1 %v4224_v3 }
  0x64   : > { %3923 = vmatpush3.bf16.msra.mxu0 %v4197_v39 }
  0x65   : > { %3932 = vmatprep.subr.bf16.mxu0 %v4202_v44 }
  0x66   : > { %3755 = vmatpush3.bf16.msra.mxu1 %v4225_v4 }
  0x67   : > { %3925 = vmatmul.mubr.bf16.vlgmr.msra.gmra.mrb[32].mxu0 %v4199_v41  ;;  %3792 = vmatprep.subr.bf16.mxu1 %v4227_v6 }
  0x68   : > { %3928 = vmatprep.mubr.bf16.mxu0 %v4200_v42  ;;  %3933 = vmatpush3.bf16.msra.mxu0 %v4202_v44 }
  0x69   : > { %3934 = vmatprep.subr.bf16.mxu0 %v4205_v47 }
  0x6c   : > { %3935 = vmatpush3.bf16.msra.mxu0 %v4205_v47 }
  0x6d   : > { %3936 = vmatprep.subr.bf16.mxu0 %v4208_v50 }
  0x6f   : > { %3929 = vmatmul.mubr.bf16.gmra.mrb[36].mxu0 %v4201_v43 }
  0x70   : > { %3937 = vmatpush3.bf16.msra.mxu0 %v4208_v50 }
  0x71   : > { %3938 = vmatprep.subr.bf16.mxu0 %v4211_v53 }
  0x74   : > { %3939 = vmatpush3.bf16.msra.mxu0 %v4211_v53 }
  0x75   : > { %3940 = vmatprep.subr.bf16.mxu0 %v4214_v57 }
  0x78   : > { %3941 = vmatpush3.bf16.msra.mxu0 %v4214_v57 }
  0x79   : > { %3942 = vmatprep.subr.bf16.mxu0 %v4217_v60 }
  0x7c   : > { %3943 = vmatpush3.bf16.msra.mxu0 %v4217_v60 }
  0x7d   : > { %3944 = vmatprep.subr.bf16.mxu0 %v4220_v63 }
  0x80   : > { %3945 = vmatpush3.bf16.msra.mxu0 %v4220_v63 }
  0x81   : > { %3946 = vmatprep.subr.bf16.mxu0 %v4223_v2 }
  0x84   : > { %3947 = vmatpush3.bf16.msra.mxu0 %v4223_v2 }
  0x85   : > { %3956 = vmatprep.subr.bf16.mxu0 %v4717_v5 }
  0xfa   : > { %v3584_v7 = vpop.f32.mrb[0].mxu0 }
  0xfb   : > { %v3624_v8 = vpop.f32.mrb[0].mxu1  ;;  %v3585_v9 = vpop.f32.mrb[1].mxu0 }
  0xfc   : > { %v3586_v10 = vadd.f32 %v3585_v9, %v3584_v7  ;;  %v3625_v11 = vpop.f32.mrb[1].mxu1  ;;  %v3587_v12 = vpop.f32.mrb[2].mxu0 }
  0xfd   : > { %v3626_v13 = vadd.f32 %v3625_v11, %v3624_v8  ;;  %v3627_v14 = vpop.f32.mrb[2].mxu1  ;;  %v3588_v15 = vpop.f32.mrb[3].mxu0 }
  0xfe   : > { %v3589_v16 = vadd.f32 %v3588_v15, %v3587_v12  ;;  %v3628_v17 = vpop.f32.mrb[3].mxu1 }
  0xff   : > { %v1261_v18 = vadd.f32 %v3626_v13, %v3586_v10  ;;  %v3629_v19 = vadd.f32 %v3628_v17, %v3627_v14 }
 0x101   : > { %v1264_v20 = vadd.f32 %v3629_v19, %v3589_v16 }
 0x102   : > { %v3590_v21 = vpop.f32.mrb[4].mxu0 }
 0x103   : > { %v3630_v22 = vpop.f32.mrb[4].mxu1  ;;  %v3591_v23 = vpop.f32.mrb[5].mxu0 }
 0x104   : > { %v3592_v24 = vadd.f32 %v3591_v23, %v3590_v21  ;;  %v3631_v25 = vpop.f32.mrb[5].mxu1  ;;  %v3593_v26 = vpop.f32.mrb[6].mxu0 }
 0x105   : > { %v3632_v27 = vadd.f32 %v3631_v25, %v3630_v22  ;;  %v3633_v28 = vpop.f32.mrb[6].mxu1  ;;  %v3594_v29 = vpop.f32.mrb[7].mxu0 }
 0x106   : > { %v3595_v30 = vadd.f32 %v3594_v29, %v3593_v26  ;;  %v3634_v31 = vpop.f32.mrb[7].mxu1 }
 0x107   : > { %v1269_v32 = vadd.f32 %v3632_v27, %v3592_v24  ;;  %v3635_v33 = vadd.f32 %v3634_v31, %v3633_v28 }
 0x109   : > { %v1272_v34 = vadd.f32 %v3635_v33, %v3595_v30 }
 0x10a   : > { %v3596_v35 = vpop.f32.mrb[8].mxu0 }
 0x10b   : > { %v3636_v36 = vpop.f32.mrb[8].mxu1  ;;  %v3597_v37 = vpop.f32.mrb[9].mxu0 }
 0x10c   : > { %v3598_v38 = vadd.f32 %v3597_v37, %v3596_v35  ;;  %v3637_v39 = vpop.f32.mrb[9].mxu1  ;;  %v3599_v40 = vpop.f32.mrb[10].mxu0 }
 0x10d   : > { %v3638_v41 = vadd.f32 %v3637_v39, %v3636_v36  ;;  %v3639_v42 = vpop.f32.mrb[10].mxu1  ;;  %v3600_v43 = vpop.f32.mrb[11].mxu0 }
 0x10e   : > { %v3601_v44 = vadd.f32 %v3600_v43, %v3599_v40  ;;  %v3640_v45 = vpop.f32.mrb[11].mxu1 }
 0x10f   : > { %v1277_v46 = vadd.f32 %v3638_v41, %v3598_v38  ;;  %v3641_v47 = vadd.f32 %v3640_v45, %v3639_v42 }
 0x111   : > { %v1280_v48 = vadd.f32 %v3641_v47, %v3601_v44 }
 0x112   : > { %v3602_v49 = vpop.f32.mrb[12].mxu0 }
 0x113   : > { %v3642_v50 = vpop.f32.mrb[12].mxu1  ;;  %v3603_v51 = vpop.f32.mrb[13].mxu0 }
 0x114   : > { %v3643_v52 = vpop.f32.mrb[13].mxu1  ;;  %v3604_v53 = vadd.f32 %v3603_v51, %v3602_v49  ;;  %v3605_v55 = vpop.f32.mrb[14].mxu0 }
 0x115   : > { %v3644_v54 = vadd.f32 %v3643_v52, %v3642_v50  ;;  %v3645_v57 = vpop.f32.mrb[14].mxu1  ;;  %v3606_v58 = vpop.f32.mrb[15].mxu0 }
 0x116   : > { %v3646_v59 = vpop.f32.mrb[15].mxu1  ;;  %v3607_v61 = vadd.f32 %v3606_v58, %v3605_v55 }
 0x117   : > { %v1285_v60 = vadd.f32 %v3644_v54, %v3604_v53  ;;  %v3647_v62 = vadd.f32 %v3646_v59, %v3645_v57 }
 0x119   : > { %v1288_v63 = vadd.f32 %v3647_v62, %v3607_v61 }
 0x11a   : > { %v3664_v0 = vpop.f32.mrb[16].mxu0 }
 0x11b   : > { %v3665_v1 = vpop.f32.mrb[17].mxu0  ;;  %v3704_v7 = vpop.f32.mrb[16].mxu1 }
 0x11c   : > { %v3666_v2 = vadd.f32 %v3665_v1, %v3664_v0  ;;  %v3667_v3 = vpop.f32.mrb[18].mxu0  ;;  %v3705_v9 = vpop.f32.mrb[17].mxu1 }
 0x11d   : > { %v3668_v4 = vpop.f32.mrb[19].mxu0  ;;  %v3706_v11 = vadd.f32 %v3705_v9, %v3704_v7  ;;  %v3707_v12 = vpop.f32.mrb[18].mxu1 }
 0x11e   : > { %v1326_v6 = vadd.f32 %v3666_v2, %v1261_v18  ;;  %v3669_v8 = vadd.f32 %v3668_v4, %v3667_v3  ;;  %v3708_v13 = vpop.f32.mrb[19].mxu1  ;;  %v3307_v4 = vld [vmem:[%s5020_s2] ss:$0 sm:$0xff] }
 0x11f   : > { %v3709_v14 = vadd.f32 %v3708_v13, %v3707_v12 }
 0x120   : > { %v1329_v10 = vadd.f32 %v3669_v8, %v1264_v20  ;;  %v1391_v16 = vadd.f32 %v3706_v11, %v1326_v6 }
 0x122   : > { %v3670_v15 = vpop.f32.mrb[20].mxu0  ;;  %v1394_v22 = vadd.f32 %v3709_v14, %v1329_v10 }
 0x123   : > { %v3671_v17 = vpop.f32.mrb[21].mxu0 }
 0x124   : > { %v3672_v19 = vadd.f32 %v3671_v17, %v3670_v15  ;;  %v3673_v21 = vpop.f32.mrb[22].mxu0  ;;  %v3710_v25 = vpop.f32.mrb[20].mxu1 }
 0x125   : > { %v3674_v23 = vpop.f32.mrb[23].mxu0  ;;  %v3711_v27 = vpop.f32.mrb[21].mxu1 }
 0x126   : > { %v1334_v24 = vadd.f32 %v3672_v19, %v1269_v32  ;;  %v3675_v26 = vadd.f32 %v3674_v23, %v3673_v21  ;;  %v3712_v28 = vadd.f32 %v3711_v27, %v3710_v25  ;;  %v3713_v29 = vpop.f32.mrb[22].mxu1 }
 0x127   : > { %v3714_v30 = vpop.f32.mrb[23].mxu1 }
 0x128   : > { %v1337_v18 = vadd.f32 %v3675_v26, %v1272_v34  ;;  %v3715_v20 = vadd.f32 %v3714_v30, %v3713_v29  ;;  %v1399_v33 = vadd.f32 %v3712_v28, %v1334_v24 }
 0x12a   : > { %v3676_v31 = vpop.f32.mrb[24].mxu0  ;;  %v1402_v38 = vadd.f32 %v3715_v20, %v1337_v18 }
 0x12b   : > { %v3677_v35 = vpop.f32.mrb[25].mxu0 }
 0x12c   : > { %v3678_v36 = vadd.f32 %v3677_v35, %v3676_v31  ;;  %v3679_v37 = vpop.f32.mrb[26].mxu0  ;;  %v3716_v41 = vpop.f32.mrb[24].mxu1 }
 0x12d   : > { %v3680_v39 = vpop.f32.mrb[27].mxu0  ;;  %v3717_v43 = vpop.f32.mrb[25].mxu1 }
 0x12e   : > { %v1342_v40 = vadd.f32 %v3678_v36, %v1277_v46  ;;  %v3681_v42 = vadd.f32 %v3680_v39, %v3679_v37  ;;  %v3718_v44 = vadd.f32 %v3717_v43, %v3716_v41  ;;  %v3719_v45 = vpop.f32.mrb[26].mxu1 }
 0x12f   : > { %v3720_v47 = vpop.f32.mrb[27].mxu1 }
 0x130   : > { %v1345_v32 = vadd.f32 %v3681_v42, %v1280_v48  ;;  %v3721_v34 = vadd.f32 %v3720_v47, %v3719_v45  ;;  %v1407_v50 = vadd.f32 %v3718_v44, %v1342_v40 }
 0x132   : > { %v3682_v49 = vpop.f32.mrb[28].mxu0  ;;  %v1410_v54 = vadd.f32 %v3721_v34, %v1345_v32 }
 0x133   : > { %v3683_v51 = vpop.f32.mrb[29].mxu0 }
 0x134   : > { %v3684_v52 = vadd.f32 %v3683_v51, %v3682_v49  ;;  %v3685_v53 = vpop.f32.mrb[30].mxu0  ;;  %v3722_v58 = vpop.f32.mrb[28].mxu1 }
 0x135   : > { %v3686_v55 = vpop.f32.mrb[31].mxu0  ;;  %v3723_v61 = vpop.f32.mrb[29].mxu1 }
 0x136   : > { %v1350_v57 = vadd.f32 %v3684_v52, %v1285_v60  ;;  %v3687_v59 = vadd.f32 %v3686_v55, %v3685_v53  ;;  %v3724_v62 = vadd.f32 %v3723_v61, %v3722_v58  ;;  %v3725_v0 = vpop.f32.mrb[30].mxu1  ;;  %v3308_v60 = vld [vmem:[%s5021_s3] ss:$0 sm:$0xff] }
 0x137   : > { %v3726_v1 = vpop.f32.mrb[31].mxu1 }
 0x138   : > { %v1353_v46 = vadd.f32 %v3687_v59, %v1288_v63  ;;  %v3727_v48 = vadd.f32 %v3726_v1, %v3725_v0  ;;  %v1415_v2 = vadd.f32 %v3724_v62, %v1350_v57  ;;  %v4229_v1 = vld [vmem:[%s5022_s4 + $0x88] sm:$0xff]  }
 0x13a   : > { %v3926_v3 = vpop.f32.mrb[32].mxu0  ;;  %v1418_v8 = vadd.f32 %v3727_v48, %v1353_v46  ;;  %v4228_v46 = vld [vmem:[%s5022_s4] sm:$0xff]   ;;  %v4230_v48 = vld [vmem:[%s5022_s4 + $0x48] sm:$0xff]  }
 0x13b   : > { %v1464_v6 = vadd.f32 %v3926_v3, %v1399_v33  ;;  %v1455_v7 = vpop.f32.mrb[33].mxu0  ;;  %v4231_v3 = vld [vmem:[%s5022_s4 + $0x8] sm:$0xff]  }
 0x13c   : > { %v1456_v9 = vadd.f32 %v1455_v7, %v1391_v16  ;;  %v3927_v10 = vpop.f32.mrb[34].mxu0  ;;  %v4233_v7 = vld [vmem:[%s5022_s4 + $0x50] sm:$0xff]  }
 0x13d   : > { %v1495_v63 = vmul.f32 %v3307_v4, %v1464_v6  ;;  %v1467_v11 = vadd.f32 %v3927_v10, %v1402_v38  ;;  %v1458_v12 = vpop.f32.mrb[35].mxu0 }
 0x13e   : > { %v1493_v13 = vmul.f32 %v3307_v4, %v1456_v9  ;;  %v1459_v14 = vadd.f32 %v1458_v12, %v1394_v22  ;;  %v4234_v12 = vld [vmem:[%s5022_s4 + $0x10] sm:$0xff]  }
 0x13f   : > { %v1510_v15 = vadd.f32 %v3308_v60, %v1495_v63  ;;  %v1496_v17 = vmul.f32 %v3307_v4, %v1467_v11 }
 0x140   : > { %v1508_v19 = vadd.f32 %v3308_v60, %v1493_v13  ;;  %v1494_v21 = vmul.f32 %v3307_v4, %v1459_v14  ;;  %v1570_v13 = vld [vmem:[#allocation2 + $0x2] sm:$0xff] }
 0x141   : > { %v1518_v23 = vmax.f32 %v1510_v15, 0.0  ;;  %v1511_v24 = vadd.f32 %v3308_v60, %v1496_v17  ;;  %v4235_v15 = vld [vmem:[%s5022_s4 + $0x98] sm:$0xff]  }
 0x142   : > { %v4729_v25 = vmax.f32 %v1508_v19, 0.0  ;;  %v1509_v26 = vadd.f32 %v3308_v60, %v1494_v21  ;;  %v3930_v27 = vpop.f32.mrb[36].mxu0  ;;  %v4236_v17 = vld [vmem:[%s5022_s4 + $0x58] sm:$0xff]  }
 0x143   : > { %1548 = vst [vmem:[#allocation2 + $0x31] sm:$0xff] %v1518_v23  ;;  %v1519_v18 = vmax.f32 %v1511_v24, 0.0  ;;  %v1480_v28 = vadd.f32 %v3930_v27, %v1415_v2  ;;  %v1471_v16 = vpop.f32.mrb[37].mxu0  ;;  %v4237_v21 = vld [vmem:[%s5022_s4 + $0x18] sm:$0xff]  }
 0x144   : > { %1546 = vst [vmem:[#allocation2 + $0x11] sm:$0xff] %v4729_v25  ;;  %v1517_v29 = vmax.f32 %v1509_v26, 0.0  ;;  %v1472_v30 = vadd.f32 %v1471_v16, %v1407_v50  ;;  %v3931_v20 = vpop.f32.mrb[38].mxu0  ;;  %v4239_v26 = vld [vmem:[%s5022_s4 + $0x60] sm:$0xff]   ;;  %v4241_v16 = vld [vmem:[%s5022_s4 + $0xa8] sm:$0xff]  }
 0x145   : > { %1549 = vst [vmem:[#allocation2 + $0x41] sm:$0xff] %v1519_v18  ;;  %v1499_v22 = vmul.f32 %v3307_v4, %v1480_v28  ;;  %v1483_v31 = vadd.f32 %v3931_v20, %v1418_v8  ;;  %v1474_v33 = vpop.f32.mrb[39].mxu0  ;;  %v3536_v35 = vpack.c.bf16 %v1519_v18, %v1518_v23  ;;  %v4240_v28 = vld [vmem:[%s5022_s4 + $0x20] sm:$0xff]   ;;  %v4244_v20 = vld [vmem:[%s5022_s4 + $0xb0] sm:$0xff]  }
 0x146   : > { %1547 = vst [vmem:[#allocation2 + $0x21] sm:$0xff] %v1517_v29  ;;  %v1497_v36 = vmul.f32 %v3307_v4, %v1472_v30  ;;  %v1475_v37 = vadd.f32 %v1474_v33, %v1410_v54  ;;  %v3533_v38 = vpack.c.bf16 %v1517_v29, %v4729_v25  ;;  %v4733_v39 = vpack.c.bf16 %v1518_v23, %v1517_v29  ;;  %v4238_v23 = vld [vmem:[%s5022_s4 + $0xa0] sm:$0xff]   ;;  %v4242_v29 = vld [vmem:[%s5022_s4 + $0x68] sm:$0xff]  }
 0x147   : > { %v1514_v40 = vadd.f32 %v3308_v60, %v1499_v22  ;;  %v1500_v41 = vmul.f32 %v3307_v4, %v1483_v31  ;;  %v4243_v30 = vld [vmem:[%s5022_s4 + $0x28] sm:$0xff]   ;;  %v4245_v31 = vld [vmem:[%s5022_s4 + $0x70] sm:$0xff]  }
 0x148   : > { %v1512_v42 = vadd.f32 %v3308_v60, %v1497_v36  ;;  %v1498_v43 = vmul.f32 %v3307_v4, %v1475_v37  ;;  %2043 = vmatprep.mubr.bf16.mxu1 %v3533_v38  ;;  %v4232_v4 = vld [vmem:[%s5022_s4 + $0x90] sm:$0xff]   ;;  %v1562_v33 = vld [vmem:[#allocation2 + $0x1] sm:$0xff] }
 0x149   : > { %v4735_v32 = vmax.f32 %v1514_v40, 0.0  ;;  %v1515_v44 = vadd.f32 %v3308_v60, %v1500_v41  ;;  %v4246_v37 = vld [vmem:[%s5022_s4 + $0x30] sm:$0xff]   ;;  %v3545_v38 = vpack.c.bf16 %v4729_v25, %v1562_v33  ;;  %v4247_v40 = vld [vmem:[%s5022_s4 + $0xb8] sm:$0xff]   ;;  %v4250_v25 = vld [vmem:[%s5022_s4 + $0x200] sm:$0xff]  }
 0x14a   : > { %v1520_v45 = vmax.f32 %v1512_v42, 0.0  ;;  %v1513_v47 = vadd.f32 %v3308_v60, %v1498_v43  ;;  %v4756_v61 = vld [vmem:[#allocation2 + $0x32] sm:$0xff]  ;;  %v4251_v43 = vld [vmem:[%s5022_s4 + $0x1c0] sm:$0xff]  }
 0x14b   : > { %1552 = vst [vmem:[#allocation2 + $0x71] sm:$0xff] %v4735_v32  ;;  %v4738_v34 = vmax.f32 %v1515_v44, 0.0  ;;  %v1714_v50 = vld [vmem:[#allocation2 + $0x12] sm:$0xff] }
 0x14c   : > { %1550 = vst [vmem:[#allocation2 + $0x51] sm:$0xff] %v1520_v45  ;;  %v1521_v49 = vmax.f32 %v1513_v47, 0.0  ;;  %v4740_v51 = vld [vmem:[#allocation2 + $0x42] sm:$0xff]  ;;  %v4742_v52 = vpack.c.bf16 %v1520_v45, %v1519_v18  ;;  %v4747_v54 = vld [vmem:[#allocation2 + $0x10] sm:$0xff]  ;;  %v3546_v19 = vpack.c.bf16 %v1714_v50, %v1570_v13  ;;  %v4248_v41 = vld [vmem:[%s5022_s4 + $0x78] sm:$0xff]  }
 0x14d   : > { %1553 = vst [vmem:[#allocation2 + $0x81] sm:$0xff] %v4738_v34  ;;  %v4745_v53 = vld [vmem:[#allocation2 + $0x22] sm:$0xff]  ;;  %v3542_v57 = vpack.c.bf16 %v4738_v34, %v4735_v32  ;;  %v3537_v0 = vpack.c.bf16 %v4740_v51, %v4756_v61  ;;  %v4790_v9 = vld [vmem:[#allocation2 + $0x30] sm:$0xff]  ;;  %v4249_v42 = vld [vmem:[%s5022_s4 + $0x38] sm:$0xff]   ;;  %v3544_v44 = vpack.c.bf16 %v4747_v54, %v4294_v56 }
 0x14e   : > { %v4749_v55 = vld [vmem:[#allocation2 + $0x20] sm:$0xff]  ;;  %1551 = vst [vmem:[#allocation2 + $0x61] sm:$0xff] %v1521_v49  ;;  %v3534_v58 = vpack.c.bf16 %v4745_v53, %v1714_v50  ;;  %v3539_v62 = vpack.c.bf16 %v1521_v49, %v1520_v45  ;;  %v4770_v2 = vpack.c.bf16 %v4735_v32, %v1521_v49  ;;  %v3549_v32 = vpack.c.bf16 %v4756_v61, %v4745_v53  ;;  %v4253_v49 = vld [vmem:[%s5022_s4 + $0x208] sm:$0xff]   ;;  %v4256_v53 = vld [vmem:[%s5022_s4 + $0x210] sm:$0xff]  }
 0x14f   : > { %v3532_v59 = vpack.c.bf16 %v4749_v55, %v4747_v54  ;;  %v4779_v6 = vld [vmem:[#allocation2 + $0x40] sm:$0xff]  ;;  %v4254_v50 = vld [vmem:[%s5022_s4 + $0x1c8] sm:$0xff]   ;;  %v4257_v54 = vld [vmem:[%s5022_s4 + $0x1d0] sm:$0xff]  }
 0x150   : > { %3948 = vmatprep.mubr.bf16.mxu0 %v3534_v58  ;;  %v3535_v63 = vpack.c.bf16 %v4779_v6, %v4790_v9  ;;  %v4252_v45 = vld [vmem:[%s5022_s4 + $0x180] sm:$0xff]   ;;  %v3547_v58 = vpack.c.bf16 %v4790_v9, %v4749_v55  ;;  %v4259_v61 = vld [vmem:[%s5022_s4 + $0x218] sm:$0xff]   ;;  %v4270_v9 = vld [vmem:[%s5022_s4 + $0x1b0] sm:$0xff]  }
 0x151   : > { %2044 = vmatmul.mubr.bf16.vlgmr.msra.gmra.mrb[32].mxu1 %v3532_v59  ;;  %3949 = vmatmul.mubr.bf16.vlgmr.msra.gmra.mrb[40].mxu0 %v3537_v0  ;;  %v4258_v59 = vld [vmem:[%s5022_s4 + $0x190] sm:$0xff]   ;;  %v4261_v55 = vld [vmem:[%s5022_s4 + $0x198] sm:$0xff]   ;;  %v4263_v0 = vld [vmem:[%s5022_s4 + $0x1e0] sm:$0xff]  }
 0x152   : > { %2051 = vmatprep.mubr.bf16.mxu1 %v3536_v35  ;;  %3957 = vmatpush3.bf16.msra.mxu0 %v4717_v5  ;;  %v4796_v11 = vld [vmem:[#allocation2 + $0x72] sm:$0xff]  ;;  %v4275_v13 = vld [vmem:[%s5025_s7 + $0x8] sm:$0xff]  }
 0x153   : > { %3793 = vmatpush3.bf16.msra.mxu1 %v4228_v46  ;;  %3958 = vmatprep.subr.bf16.mxu0 %v4229_v1  ;;  %v4786_v5 = vld [vmem:[#allocation2 + $0x52] sm:$0xff] }
 0x154   : > { %3794 = vmatprep.subr.bf16.mxu1 %v4230_v48  ;;  %v4784_v8 = vld [vmem:[#allocation2 + $0x82] sm:$0xff]  ;;  %v4820_v27 = vld [vmem:[#allocation2 + $0x50] sm:$0xff]  ;;  %v4876_v47 = vpack.c.bf16 %v4786_v5, %v4740_v51  ;;  %v4260_v46 = vld [vmem:[%s5022_s4 + $0x1d8] sm:$0xff]  }
 0x155   : > { %v4788_v60 = vld [vmem:[#allocation2 + $0x62] sm:$0xff]  ;;  %v3543_v14 = vpack.c.bf16 %v4784_v8, %v4796_v11  ;;  %v4844_v35 = vld [vmem:[#allocation2 + $0x70] sm:$0xff] }
 0x156   : > { %3959 = vmatpush3.bf16.msra.mxu0 %v4229_v1  ;;  %v3540_v10 = vpack.c.bf16 %v4788_v60, %v4786_v5  ;;  %v4815_v24 = vld [vmem:[#allocation2 + $0x60] sm:$0xff]  ;;  %v4255_v51 = vld [vmem:[%s5022_s4 + $0x188] sm:$0xff]   ;;  %v3550_v1 = vpack.c.bf16 %v4820_v27, %v4779_v6  ;;  %v4269_v5 = vld [vmem:[%s5022_s4 + $0x1f0] sm:$0xff]  }
 0x157   : > { %3795 = vmatpush3.bf16.msra.mxu1 %v4231_v3  ;;  %3960 = vmatprep.subr.bf16.mxu0 %v4232_v4  ;;  %v3538_v18 = vpack.c.bf16 %v4815_v24, %v4820_v27  ;;  %v4839_v22 = vld [vmem:[#allocation2 + $0x80] sm:$0xff]  ;;  %v4265_v3 = vld [vmem:[%s5022_s4 + $0x228] sm:$0xff]  }
 0x158   : > { %3796 = vmatprep.subr.bf16.mxu1 %v4233_v7  ;;  %3952 = vmatprep.mubr.bf16.mxu0 %v3540_v10  ;;  %v3541_v36 = vpack.c.bf16 %v4839_v22, %v4844_v35  ;;  %v4264_v48 = vld [vmem:[%s5022_s4 + $0x1a0] sm:$0xff]   ;;  %v4267_v6 = vld [vmem:[%s5022_s4 + $0x1a8] sm:$0xff]   ;;  %v4268_v7 = vld [vmem:[%s5022_s4 + $0x230] sm:$0xff]  }
 0x159   : > { %2052 = vmatmul.mubr.bf16.gmra.mrb[36].mxu1 %v3535_v63  ;;  %3953 = vmatmul.mubr.bf16.gmra.mrb[44].mxu0 %v3543_v14  ;;  %v4271_v10 = vld [vmem:[%s5022_s4 + $0x238] sm:$0xff]   ;;  %v4276_v14 = vld [vmem:[%s5025_s7 + $0x10] sm:$0xff]   ;;  %v4284_v27 = vld [vmem:[%s4458_s24 + $0xa0] ss:$36 sps:$4 sm:$0xff]  }
 0x15a   : > { %2059 = vmatprep.mubr.bf16.mxu1 %v3539_v62  ;;  %3961 = vmatpush3.bf16.msra.mxu0 %v4232_v4  ;;  %v4262_v62 = vld [vmem:[%s5022_s4 + $0x220] sm:$0xff]   ;;  %v4266_v4 = vld [vmem:[%s5022_s4 + $0x1e8] sm:$0xff]   ;;  %v4272_v63 = vld [vmem:[%s5022_s4 + $0x1f8] sm:$0xff]  }
 0x15b   : > { %3797 = vmatpush3.bf16.msra.mxu1 %v4234_v12  ;;  %3972 = vmatprep.mubr.bf16.mxu0 %v3546_v19  ;;  %v4274_v12 = vld [vmem:[%s5025_s7] sm:$0xff]   ;;  %v2455_v19 = vld [vmem:[#allocation2 + $0x91] sm:$0xff] }
 0x15c   : > { %3962 = vmatprep.subr.bf16.mxu0 %v4235_v15  ;;  %3798 = vmatprep.subr.bf16.mxu1 %v4236_v17  ;;  %v4277_v17 = vld [vmem:[%s5025_s7 + $0x18] sm:$0xff]  }
 0x15e   : > { %3963 = vmatpush3.bf16.msra.mxu0 %v4235_v15 }
 0x15f   : > { %3799 = vmatpush3.bf16.msra.mxu1 %v4237_v21  ;;  %3964 = vmatprep.subr.bf16.mxu0 %v4238_v23  ;;  %v3566_v21 = vpack.c.bf16 %v2455_v19, %v4738_v34  ;;  %v4281_v34 = vld [vmem:[%s5025_s7 + $0x38] sm:$0xff]  }
 0x160   : > { %3800 = vmatprep.subr.bf16.mxu1 %v4239_v26  ;;  %v4283_v26 = vld [vmem:[%s4458_s24 + $0x58] ss:$36 sps:$4 sm:$0xff]  }
 0x161   : > { %2060 = vmatmul.mubr.bf16.gmra.mrb[40].mxu1 %v3538_v18  ;;  %v4285_v18 = vld [vmem:[%s4458_s24 + $0xe8] ss:$36 sps:$4 sm:$0xff]  }
 0x162   : > { %2067 = vmatprep.mubr.bf16.mxu1 %v3542_v57  ;;  %3965 = vmatpush3.bf16.msra.mxu0 %v4238_v23  ;;  %v3555_v57 = vpack.c.bf16 %v4796_v11, %v4788_v60  ;;  %v3553_v60 = vpack.c.bf16 %v4844_v35, %v4815_v24  ;;  %v4273_v11 = vld [vmem:[%s5022_s4 + $0x1b8] sm:$0xff]   ;;  %v4282_v23 = vld [vmem:[%s4458_s24 + $0x10] ss:$36 sps:$4 sm:$0xff]   ;;  %v3565_v24 = vpack.c.bf16 %v4294_v56, %v4839_v22 }
 0x163   : > { %3801 = vmatpush3.bf16.msra.mxu1 %v4240_v28  ;;  %3966 = vmatprep.subr.bf16.mxu0 %v4241_v16 }
 0x164   : > { %3802 = vmatprep.subr.bf16.mxu1 %v4242_v29 }
 0x166   : > { %3967 = vmatpush3.bf16.msra.mxu0 %v4241_v16 }
 0x167   : > { %3803 = vmatpush3.bf16.msra.mxu1 %v4243_v30  ;;  %3968 = vmatprep.subr.bf16.mxu0 %v4244_v20 }
 0x168   : > { %3804 = vmatprep.subr.bf16.mxu1 %v4245_v31 }
 0x169   : > { %2068 = vmatmul.mubr.bf16.gmra.mrb[44].mxu1 %v3541_v36 }
 0x16a   : > { %2341 = vmatprep.mubr.bf16.mxu1 %v3545_v38  ;;  %3969 = vmatpush3.bf16.msra.mxu0 %v4244_v20 }
 0x16b   : > { %3805 = vmatpush3.bf16.msra.mxu1 %v4246_v37  ;;  %3970 = vmatprep.subr.bf16.mxu0 %v4247_v40 }
 0x16c   : > { %3806 = vmatprep.subr.bf16.mxu1 %v4248_v41 }
 0x16e   : > { %3971 = vmatpush3.bf16.msra.mxu0 %v4247_v40 }
 0x16f   : > { %3807 = vmatpush3.bf16.msra.mxu1 %v4249_v42  ;;  %3980 = vmatprep.subr.bf16.mxu0 %v4250_v25 }
 0x170   : > { %3844 = vmatprep.subr.bf16.mxu1 %v4251_v43 }
 0x171   : > { %3973 = vmatmul.mubr.bf16.vlgmr.msra.gmra.mrb[40].mxu0 %v3549_v32 }
 0x172   : > { %2342 = vmatmul.mubr.bf16.vlgmr.msra.gmra.mrb[48].mxu1 %v3544_v44  ;;  %3976 = vmatprep.mubr.bf16.mxu0 %v4876_v47 }
 0x173   : > { %3981 = vmatpush3.bf16.msra.mxu0 %v4250_v25  ;;  %2349 = vmatprep.mubr.bf16.mxu1 %v4733_v39 }
 0x174   : > { %3845 = vmatpush3.bf16.msra.mxu1 %v4252_v45  ;;  %3982 = vmatprep.subr.bf16.mxu0 %v4253_v49 }
 0x175   : > { %3846 = vmatprep.subr.bf16.mxu1 %v4254_v50 }
 0x177   : > { %3983 = vmatpush3.bf16.msra.mxu0 %v4253_v49 }
 0x178   : > { %3847 = vmatpush3.bf16.msra.mxu1 %v4255_v51  ;;  %3984 = vmatprep.subr.bf16.mxu0 %v4256_v53 }
 0x179   : > { %3848 = vmatprep.subr.bf16.mxu1 %v4257_v54  ;;  %3977 = vmatmul.mubr.bf16.gmra.mrb[44].mxu0 %v3555_v57 }
 0x17a   : > { %2350 = vmatmul.mubr.bf16.gmra.mrb[52].mxu1 %v3547_v58  ;;  %3996 = vmatprep.mubr.bf16.mxu0 %v3549_v32 }
 0x17b   : > { %3985 = vmatpush3.bf16.msra.mxu0 %v4256_v53  ;;  %2357 = vmatprep.mubr.bf16.mxu1 %v4742_v52 }
 0x17c   : > { %3849 = vmatpush3.bf16.msra.mxu1 %v4258_v59  ;;  %3986 = vmatprep.subr.bf16.mxu0 %v4259_v61 }
 0x17d   : > { %3850 = vmatprep.subr.bf16.mxu1 %v4260_v46 }
 0x17f   : > { %3987 = vmatpush3.bf16.msra.mxu0 %v4259_v61 }
 0x180   : > { %3851 = vmatpush3.bf16.msra.mxu1 %v4261_v55  ;;  %3988 = vmatprep.subr.bf16.mxu0 %v4262_v62 }
 0x181   : > { %3852 = vmatprep.subr.bf16.mxu1 %v4263_v0 }
 0x182   : > { %2358 = vmatmul.mubr.bf16.gmra.mrb[56].mxu1 %v3550_v1 }
 0x183   : > { %3989 = vmatpush3.bf16.msra.mxu0 %v4262_v62  ;;  %2365 = vmatprep.mubr.bf16.mxu1 %v4770_v2 }
 0x184   : > { %3853 = vmatpush3.bf16.msra.mxu1 %v4264_v48  ;;  %3990 = vmatprep.subr.bf16.mxu0 %v4265_v3 }
 0x185   : > { %3854 = vmatprep.subr.bf16.mxu1 %v4266_v4 }
 0x187   : > { %3991 = vmatpush3.bf16.msra.mxu0 %v4265_v3 }
 0x188   : > { %3855 = vmatpush3.bf16.msra.mxu1 %v4267_v6  ;;  %3992 = vmatprep.subr.bf16.mxu0 %v4268_v7 }
 0x189   : > { %3856 = vmatprep.subr.bf16.mxu1 %v4269_v5 }
 0x18a   : > { %2366 = vmatmul.mubr.bf16.gmra.mrb[60].mxu1 %v3553_v60 }
 0x18b   : > { %3993 = vmatpush3.bf16.msra.mxu0 %v4268_v7  ;;  %2785 = vmatprep.mubr.bf16.mxu1 %v4733_v39  ;;  %v2463_v39 = vld [vmem:[#allocation2 + $0x92] sm:$0xff] }
 0x18c   : > { %3857 = vmatpush3.bf16.msra.mxu1 %v4270_v9  ;;  %3994 = vmatprep.subr.bf16.mxu0 %v4271_v10  ;;  %v3567_v15 = vpack.c.bf16 %v2463_v39, %v4784_v8  ;;  %v4279_v8 = vld [vmem:[%s5025_s7 + $0x28] sm:$0xff]  }
 0x18d   : > { %3858 = vmatprep.subr.bf16.mxu1 %v4272_v63 }
 0x18f   : > { %3995 = vmatpush3.bf16.msra.mxu0 %v4271_v10 }
 0x190   : > { %3859 = vmatpush3.bf16.msra.mxu1 %v4273_v11 }
 0x191   : > { %4004 = vmatprep.subr.bf16.mxu1 %v4274_v12 }
 0x192   : > { %3997 = vmatmul.mubr.bf16.vlgmr.msra.gmra.mrb[40].mxu0 %v4876_v47 }
 0x193   : > { %2786 = vmatmul.mubr.bf16.vlgmr.msra.gmra.mrb[64].mxu1 %v3547_v58  ;;  %4000 = vmatprep.mubr.bf16.mxu0 %v3555_v57 }
 0x194   : > { %2793 = vmatprep.mubr.bf16.mxu1 %v4742_v52  ;;  %4005 = vmatpush3.bf16.msra.mxu1 %v4274_v12  ;;  %v4278_v52 = vld [vmem:[%s5025_s7 + $0x20] sm:$0xff]  }
 0x195   : > { %4006 = vmatprep.subr.bf16.mxu1 %v4275_v13 }
 0x198   : > { %4007 = vmatpush3.bf16.msra.mxu1 %v4275_v13 }
 0x199   : > { %4008 = vmatprep.subr.bf16.mxu1 %v4276_v14 }
 0x19a   : > { %4001 = vmatmul.mubr.bf16.gmra.mrb[44].mxu0 %v3567_v15 }
 0x19b   : > { %2794 = vmatmul.mubr.bf16.gmra.mrb[68].mxu1 %v3550_v1 }
 0x19c   : > { %2801 = vmatprep.mubr.bf16.mxu1 %v4770_v2  ;;  %4009 = vmatpush3.bf16.msra.mxu1 %v4276_v14  ;;  %v4280_v2 = vld [vmem:[%s5025_s7 + $0x30] sm:$0xff]  }
 0x19d   : > { %4010 = vmatprep.subr.bf16.mxu1 %v4277_v17 }
 0x1a0   : > { %4011 = vmatpush3.bf16.msra.mxu1 %v4277_v17 }
 0x1a1   : > { %4012 = vmatprep.subr.bf16.mxu1 %v4278_v52 }
 0x1a3   : > { %2802 = vmatmul.mubr.bf16.gmra.mrb[72].mxu1 %v3553_v60 }
 0x1a4   : > { %2809 = vmatprep.mubr.bf16.mxu1 %v3566_v21  ;;  %4013 = vmatpush3.bf16.msra.mxu1 %v4278_v52 }
 0x1a5   : > { %4014 = vmatprep.subr.bf16.mxu1 %v4279_v8 }
 0x1a8   : > { %4015 = vmatpush3.bf16.msra.mxu1 %v4279_v8 }
 0x1a9   : > { %4016 = vmatprep.subr.bf16.mxu1 %v4280_v2 }
 0x1ab   : > { %2810 = vmatmul.mubr.bf16.gmra.mrb[76].mxu1 %v3565_v24 }
 0x1ac   : > { %4017 = vmatpush3.bf16.msra.mxu1 %v4280_v2  ;;  %4020 = vmatprep.mubr.bf16.mxu1 %v4282_v23 }
 0x1ad   : > { %4018 = vmatprep.subr.bf16.mxu1 %v4281_v34 }
 0x1b0   : > { %4019 = vmatpush3.bf16.msra.mxu1 %v4281_v34 }
 0x1b3   : > { %4021 = vmatmul.mubr.bf16.vlgmr.msra.gmra.mrb[80].mxu1 %v4283_v26 }
 0x1b4   : > { %4024 = vmatprep.mubr.bf16.mxu1 %v4284_v27 }
 0x1bb   : > { %4025 = vmatmul.mubr.bf16.gmra.mrb[84].mxu1 %v4285_v18 }
 0x224   : > { %v3756_v28 = vpop.f32.mrb[32].mxu1 }
 0x225   : > { %v3757_v16 = vpop.f32.mrb[33].mxu1 }
 0x226   : > { %v3758_v29 = vadd.f32 %v3757_v16, %v3756_v28  ;;  %v3759_v56 = vpop.f32.mrb[34].mxu1 }
 0x227   : > { %v3760_v30 = vpop.f32.mrb[35].mxu1 }
 0x228   : > { %v3761_v20 = vadd.f32 %v3760_v30, %v3759_v56 }
 0x22c   : > { %v3762_v22 = vpop.f32.mrb[36].mxu1 }
 0x22d   : > { %v3763_v31 = vpop.f32.mrb[37].mxu1 }
 0x22e   : > { %v3764_v33 = vadd.f32 %v3763_v31, %v3762_v22  ;;  %v3765_v35 = vpop.f32.mrb[38].mxu1 }
 0x22f   : > { %v3766_v36 = vpop.f32.mrb[39].mxu1 }
 0x230   : > { %v3767_v37 = vadd.f32 %v3766_v36, %v3765_v35 }
 0x234   : > { %v3768_v38 = vpop.f32.mrb[40].mxu1 }
 0x235   : > { %v3769_v40 = vpop.f32.mrb[41].mxu1 }
 0x236   : > { %v3770_v41 = vadd.f32 %v3769_v40, %v3768_v38  ;;  %v3771_v42 = vpop.f32.mrb[42].mxu1 }
 0x237   : > { %v3772_v25 = vpop.f32.mrb[43].mxu1 }
 0x238   : > { %v3773_v43 = vadd.f32 %v3772_v25, %v3771_v42 }
 0x23c   : > { %v3774_v32 = vpop.f32.mrb[44].mxu1 }
 0x23d   : > { %v3775_v44 = vpop.f32.mrb[45].mxu1 }
 0x23e   : > { %v3776_v45 = vadd.f32 %v3775_v44, %v3774_v32  ;;  %v3777_v47 = vpop.f32.mrb[46].mxu1 }
 0x23f   : > { %v3778_v49 = vpop.f32.mrb[47].mxu1 }
 0x240   : > { %v3779_v50 = vadd.f32 %v3778_v49, %v3777_v47 }
 0x245   : > { %v3808_v51 = vpop.f32.mrb[48].mxu1 }
 0x246   : > { %v3809_v53 = vpop.f32.mrb[49].mxu1 }
 0x247   : > { %v3810_v54 = vadd.f32 %v3809_v53, %v3808_v51  ;;  %v3811_v57 = vpop.f32.mrb[50].mxu1 }
 0x248   : > { %v3812_v58 = vpop.f32.mrb[51].mxu1 }
 0x249   : > { %v4031_v59 = vadd.f32 %v3810_v54, %v3758_v29  ;;  %v3813_v61 = vadd.f32 %v3812_v58, %v3811_v57 }
 0x24b   : > { %v4037_v46 = vadd.f32 %v3813_v61, %v3761_v20 }
 0x24d   : > { %v3814_v55 = vpop.f32.mrb[52].mxu1 }
 0x24e   : > { %v3815_v62 = vpop.f32.mrb[53].mxu1 }
 0x24f   : > { %v3816_v0 = vadd.f32 %v3815_v62, %v3814_v55  ;;  %v3817_v1 = vpop.f32.mrb[54].mxu1 }
 0x250   : > { %v3818_v48 = vpop.f32.mrb[55].mxu1 }
 0x251   : > { %v4028_v3 = vadd.f32 %v3816_v0, %v3764_v33  ;;  %v3819_v4 = vadd.f32 %v3818_v48, %v3817_v1 }
 0x253   : > { %v4034_v6 = vadd.f32 %v3819_v4, %v3767_v37 }
 0x255   : > { %v3820_v7 = vpop.f32.mrb[56].mxu1 }
 0x256   : > { %v3821_v5 = vpop.f32.mrb[57].mxu1 }
 0x257   : > { %v3822_v60 = vadd.f32 %v3821_v5, %v3820_v7  ;;  %v3823_v9 = vpop.f32.mrb[58].mxu1  ;;  %v3527_v7 = vld [vmem:[%s5026_s8] ss:$0 sm:$0xff] }
 0x258   : > { %v3824_v10 = vpop.f32.mrb[59].mxu1 }
 0x259   : > { %v4043_v63 = vadd.f32 %v3822_v60, %v3770_v41  ;;  %v3825_v11 = vadd.f32 %v3824_v10, %v3823_v9 }
 0x25b   : > { %v4049_v12 = vadd.f32 %v3825_v11, %v3773_v43 }
 0x25d   : > { %v3826_v13 = vpop.f32.mrb[60].mxu1 }
 0x25e   : > { %v3827_v39 = vpop.f32.mrb[61].mxu1 }
 0x25f   : > { %v3828_v14 = vadd.f32 %v3827_v39, %v3826_v13  ;;  %v3829_v15 = vpop.f32.mrb[62].mxu1 }
 0x260   : > { %v3830_v17 = vpop.f32.mrb[63].mxu1 }
 0x261   : > { %v4040_v52 = vadd.f32 %v3828_v14, %v3776_v45  ;;  %v3831_v19 = vadd.f32 %v3830_v17, %v3829_v15 }
 0x263   : > { %v4046_v8 = vadd.f32 %v3831_v19, %v3779_v50 }
 0x265   : > { %v3998_v21 = vpop.f32.mrb[40].mxu0 }
 0x266   : > { %v3860_v2 = vpop.f32.mrb[64].mxu1  ;;  %v2852_v23 = vpop.f32.mrb[41].mxu0 }
 0x267   : > { %v3861_v24 = vpop.f32.mrb[65].mxu1  ;;  %v3999_v34 = vpop.f32.mrb[42].mxu0 }
 0x268   : > { %v3862_v26 = vadd.f32 %v3861_v24, %v3860_v2  ;;  %v3863_v27 = vpop.f32.mrb[66].mxu1  ;;  %v2855_v18 = vpop.f32.mrb[43].mxu0 }
 0x269   : > { %v3864_v28 = vpop.f32.mrb[67].mxu1 }
 0x26a   : > { %v4032_v16 = vadd.f32 %v4031_v59, %v3862_v26  ;;  %v3865_v29 = vadd.f32 %v3864_v28, %v3863_v27 }
 0x26c   : > { %v4033_v56 = vadd.f32 %v4032_v16, %v2852_v23  ;;  %v4038_v30 = vadd.f32 %v4037_v46, %v3865_v29 }
 0x26d   : > { %v4002_v20 = vpop.f32.mrb[44].mxu0 }
 0x26e   : > { %v4039_v22 = vadd.f32 %v4038_v30, %v2855_v18  ;;  %v3866_v31 = vpop.f32.mrb[68].mxu1  ;;  %v2868_v33 = vpop.f32.mrb[45].mxu0 }
 0x26f   : > { %v3867_v35 = vpop.f32.mrb[69].mxu1  ;;  %v4003_v36 = vpop.f32.mrb[46].mxu0 }
 0x270   : > { %v3868_v37 = vadd.f32 %v3867_v35, %v3866_v31  ;;  %v3869_v38 = vpop.f32.mrb[70].mxu1  ;;  %v2871_v40 = vpop.f32.mrb[47].mxu0 }
 0x271   : > { %v3870_v41 = vpop.f32.mrb[71].mxu1 }
 0x272   : > { %v4029_v42 = vadd.f32 %v4028_v3, %v3868_v37  ;;  %v3871_v25 = vadd.f32 %v3870_v41, %v3869_v38  ;;  %v3513_v3 = vld [vmem:[%s5023_s5] ss:$0 sm:$0xff] }
 0x273   : > { %v2898_v60 = vmul.f32 %v4033_v56, %v3513_v3  ;;  %v2899_v14 = vmul.f32 %v4039_v22, %v3513_v3 }
 0x274   : > { %v4030_v43 = vadd.f32 %v4029_v42, %v3998_v21  ;;  %v4035_v32 = vadd.f32 %v4034_v6, %v3871_v25 }
 0x276   : > { %v4036_v44 = vadd.f32 %v4035_v32, %v3999_v34  ;;  %v3872_v45 = vpop.f32.mrb[72].mxu1  ;;  %v2900_v5 = vmul.f32 %v4030_v43, %v3513_v3 }
 0x277   : > { %v3873_v47 = vpop.f32.mrb[73].mxu1 }
 0x278   : > { %v3874_v49 = vadd.f32 %v3873_v47, %v3872_v45  ;;  %v3875_v50 = vpop.f32.mrb[74].mxu1  ;;  %v2901_v11 = vmul.f32 %v4036_v44, %v3513_v3 }
 0x279   : > { %v3876_v51 = vpop.f32.mrb[75].mxu1 }
 0x27a   : > { %v4044_v53 = vadd.f32 %v4043_v63, %v3874_v49  ;;  %v3877_v54 = vadd.f32 %v3876_v51, %v3875_v50  ;;  %v3528_v63 = vld [vmem:[%s5027_s9] ss:$0 sm:$0xff] }
 0x27c   : > { %v4045_v57 = vadd.f32 %v4044_v53, %v2868_v33  ;;  %v4050_v58 = vadd.f32 %v4049_v12, %v3877_v54  ;;  %v3514_v12 = vld [vmem:[%s5024_s6] ss:$0 sm:$0xff] }
 0x27d   : > { %v2913_v2 = vadd.f32 %v3514_v12, %v2898_v60  ;;  %v2916_v26 = vadd.f32 %v3514_v12, %v2901_v11  ;;  %v2914_v28 = vadd.f32 %v3514_v12, %v2899_v14 }
 0x27e   : > { %v4051_v59 = vadd.f32 %v4050_v58, %v2871_v40  ;;  %v3878_v61 = vpop.f32.mrb[76].mxu1 }
 0x27f   : > { %v3879_v46 = vpop.f32.mrb[77].mxu1 }
 0x280   : > { %v3880_v55 = vadd.f32 %v3879_v46, %v3878_v61  ;;  %v3881_v62 = vpop.f32.mrb[78].mxu1  ;;  %v2903_v40 = vmul.f32 %v4051_v59, %v3513_v3 }
 0x281   : > { %v3882_v0 = vpop.f32.mrb[79].mxu1 }
 0x282   : > { %v4041_v1 = vadd.f32 %v4040_v52, %v3880_v55  ;;  %v3883_v48 = vadd.f32 %v3882_v0, %v3881_v62  ;;  %v2915_v52 = vadd.f32 %v3514_v12, %v2900_v5  ;;  %v2918_v58 = vadd.f32 %v3514_v12, %v2903_v40 }
 0x284   : > { %v4042_v4 = vadd.f32 %v4041_v1, %v4002_v20  ;;  %v4047_v6 = vadd.f32 %v4046_v8, %v3883_v48  ;;  %v2902_v20 = vmul.f32 %v4045_v57, %v3513_v3 }
 0x286   : > { %v4048_v9 = vadd.f32 %v4047_v6, %v4003_v36  ;;  %v4022_v10 = vpop.f32.mrb[80].mxu1  ;;  %v2904_v29 = vmul.f32 %v4042_v4, %v3513_v3  ;;  %v2917_v47 = vadd.f32 %v3514_v12, %v2902_v20 }
 0x287   : > { %v3091_v13 = vmul.f32 %v4022_v10, %v3527_v7  ;;  %v3051_v39 = vpop.f32.mrb[81].mxu1 }
 0x288   : > { %v3089_v15 = vmul.f32 %v3527_v7, %v3051_v39  ;;  %v4023_v17 = vpop.f32.mrb[82].mxu1  ;;  %v2905_v35 = vmul.f32 %v4048_v9, %v3513_v3  ;;  %v2919_v43 = vadd.f32 %v3514_v12, %v2904_v29 }
 0x289   : > { %v3106_v19 = vadd.f32 %v3528_v63, %v3091_v13  ;;  %v3092_v8 = vmul.f32 %v4023_v17, %v3527_v7  ;;  %v3054_v21 = vpop.f32.mrb[83].mxu1 }
 0x28a   : > { %v3104_v23 = vadd.f32 %v3528_v63, %v3089_v15  ;;  %v3090_v24 = vmul.f32 %v3527_v7, %v3054_v21  ;;  %v2920_v53 = vadd.f32 %v3514_v12, %v2905_v35 }
 0x28b   : > { %v3114_v34 = vadd.f32 %v3106_v19, %v2915_v52  ;;  %v3107_v27 = vadd.f32 %v3528_v63, %v3092_v8 }
 0x28c   : > { %v3112_v18 = vadd.f32 %v3104_v23, %v2913_v2  ;;  %v3105_v16 = vadd.f32 %v3528_v63, %v3090_v24 }
 0x28d   : > { %v3122_v56 = vmax.f32 %v3114_v34, 0.0  ;;  %v3115_v30 = vadd.f32 %v3107_v27, %v2916_v26 }
 0x28e   : > { %v3120_v22 = vmax.f32 %v3112_v18, 0.0  ;;  %v3113_v31 = vadd.f32 %v3105_v16, %v2914_v28  ;;  %v4026_v33 = vpop.f32.mrb[84].mxu1 }
 0x28f   : > { %3130 = vst [vmem:[%s5005_s28 + $0x10] sm:$0xff] %v3122_v56  ;;  %v3123_v36 = vmax.f32 %v3115_v30, 0.0  ;;  %v3095_v37 = vmul.f32 %v4026_v33, %v3527_v7  ;;  %v3067_v38 = vpop.f32.mrb[85].mxu1 }
 0x290   : > { %3128 = vst [vmem:[%s5005_s28] sm:$0xff] %v3120_v22  ;;  %v3121_v41 = vmax.f32 %v3113_v31, 0.0  ;;  %v3093_v42 = vmul.f32 %v3527_v7, %v3067_v38  ;;  %v4027_v25 = vpop.f32.mrb[86].mxu1 }
 0x291   : > { %3131 = vst [vmem:[%s5005_s28 + $0x18] sm:$0xff] %v3123_v36  ;;  %v3110_v32 = vadd.f32 %v3528_v63, %v3095_v37  ;;  %v3096_v44 = vmul.f32 %v4027_v25, %v3527_v7  ;;  %v3070_v45 = vpop.f32.mrb[87].mxu1 }
 0x292   : > { %3129 = vst [vmem:[%s5005_s28 + $0x8] sm:$0xff] %v3121_v41  ;;  %v3108_v49 = vadd.f32 %v3528_v63, %v3093_v42  ;;  %v3094_v50 = vmul.f32 %v3527_v7, %v3070_v45 }
 0x293   : > { %v3118_v51 = vadd.f32 %v3110_v32, %v2919_v43  ;;  %v3111_v54 = vadd.f32 %v3528_v63, %v3096_v44 }
 0x294   : > { %v3116_v57 = vadd.f32 %v3108_v49, %v2917_v47  ;;  %v3109_v59 = vadd.f32 %v3528_v63, %v3094_v50 }
 0x295   : > { %v3126_v61 = vmax.f32 %v3118_v51, 0.0  ;;  %v3119_v46 = vadd.f32 %v3111_v54, %v2920_v53 }
 0x296   : > { %v3124_v55 = vmax.f32 %v3116_v57, 0.0  ;;  %v3117_v62 = vadd.f32 %v3109_v59, %v2918_v58 }
 0x297   : > { %3134 = vst [vmem:[%s5005_s28 + $0x30] sm:$0xff] %v3126_v61  ;;  %v3127_v0 = vmax.f32 %v3119_v46, 0.0 }
 0x298   : > { %3132 = vst [vmem:[%s5005_s28 + $0x20] sm:$0xff] %v3124_v55  ;;  %v3125_v1 = vmax.f32 %v3117_v62, 0.0 }
 0x299   : > { %3135 = vst [vmem:[%s5005_s28 + $0x38] sm:$0xff] %v3127_v0 }
 0x29a   : > { %3133 = vst [vmem:[%s5005_s28 + $0x28] sm:$0xff] %v3125_v1 }
 0x29b PF: > { %s20_s13 = sadd.s32 1, %s4292_s13  }
 0x29c   : > { %p17_p4 = scmp.ge.s32.totalorder %s20_s13, 4  }
 0x29e   :  { %19 = sbr.rel (!%p17_p4) target bundleno = 1 (0x1), region = 95 }

</bundles_post_ra>
